<compile_context>
chip_gen: v7x
topology: tpu7x:2x2x1
jax: 0.10.0
libtpu: 0.0.40
codegen_flags: <defaults>
</compile_context>

<pallas_src>
import jax
import jax.numpy as jnp
from jax.experimental import pallas as pl
from jax.experimental.pallas import tpu as pltpu

# ----- C3 connectivity table (from the PyTorch module) -----------------------
FEATURE_MAPS = [
    [0, 1, 2], [1, 2, 3], [2, 3, 4], [3, 4, 5], [0, 4, 5], [0, 1, 5],
    [0, 1, 2, 3], [1, 2, 3, 4], [2, 3, 4, 5], [0, 3, 4, 5], [0, 1, 4, 5],
    [0, 1, 2, 5], [0, 1, 3, 4], [1, 2, 4, 5], [0, 2, 3, 5],
    [0, 1, 2, 3, 4, 5],
]
C_IN = 6
C_PAD = 8                        # input channels padded to a sublane multiple
C_OUT = len(FEATURE_MAPS)        # 16
K = 5                            # kernel size


# ==============================================================================
# Primary path: im2col fused in-kernel.
#
# x is passed channel-major as (C_PAD, N*H*W + 128) f32.  For tap (kh, kw) the
# needed patch rows are exactly the lane-shifted view x[:, d : d + N*H*W] with
# d = kh*W + kw (valid output lanes never cross an image boundary because
# oh+kh <= H-1 and ow+kw <= W-1).  Each tap is one (16, 8) @ (8, 512) bf16 MXU
# matmul accumulated in f32; bias is a final VPU add.
# ==============================================================================
def _c3_forward_fused(x, w_dense, bias):
    n, c, h, wimg = x.shape
    assert c == C_IN
    oh, ow = h - K + 1, wimg - K + 1
    nl = n * h * wimg                       # 512 lanes for (2, 6, 16, 16)
    lane_pad = nl + 128                     # head-room for the max tap offset
    assert (K - 1) * (wimg + 1) <= 128

    # --- tiny wrapper-side layout prep (~20 KB; no 174 KB patch matrix) ------
    xm = x.transpose(1, 0, 2, 3).reshape(C_IN, nl)               # (6, N*H*W)
    xm = jnp.zeros((C_PAD, lane_pad), x.dtype).at[:C_IN, :nl].set(xm)

    # per-tap weights, tap-major: wt[kh*K + kw, co, ci] = w[co, ci, kh, kw]
    wt = (w_dense.transpose(2, 3, 0, 1)                          # (K,K,CO,CI)
          .reshape(K * K, C_OUT, C_IN).astype(jnp.bfloat16))
    wt = jnp.zeros((K * K, C_OUT, C_PAD), jnp.bfloat16).at[:, :, :C_IN].set(wt)

    b_col = bias.reshape(C_OUT, 1).astype(jnp.float32)

    def kernel(x_ref, w_ref, b_ref, o_ref):
        xm_f32 = x_ref[...]                                      # (8, lane_pad)
        acc = jnp.zeros((C_OUT, nl), jnp.float32)
        for kh in range(K):                 # 25 taps, fully unrolled
            for kw in range(K):
                t = kh * K + kw
                d = kh * wimg + kw
                # lane-shifted view of the image slab = one im2col row-group
                xs = xm_f32[:, d:d + nl].astype(jnp.bfloat16)    # (8, nl) bf16
                acc = acc + jnp.dot(w_ref[t], xs,
                                    preferred_element_type=jnp.float32)
        o_ref[...] = acc + b_ref[...]                            # bias in-kernel

    y_full = pl.pallas_call(
        kernel,
        out_shape=jax.ShapeDtypeStruct((C_OUT, nl), jnp.float32),
        # No grid: whole arrays resident in VMEM, no dead double-buffering.
        in_specs=[pl.BlockSpec(memory_space=pltpu.MemorySpace.VMEM)] * 3,
        out_specs=pl.BlockSpec(memory_space=pltpu.MemorySpace.VMEM),
    )(xm, wt, b_col)

    # Extract valid region + NCHW (tiny; a fused pipeline would instead feed
    # the next layer channel-major straight from the (C_OUT, N*H*W) slab).
    y = y_full.reshape(C_OUT, n, h, wimg)[:, :, :oh, :ow]
    return y.transpose(1, 0, 2, 3)


# ==============================================================================
# Fallback path (robustness only): wrapper im2col + one lane-dense MXU matmul,
# with padded dims (160 x 384), bf16 inputs, in-kernel bias, no grid.
# ==============================================================================
def _c3_matmul_kernel(w_ref, p_ref, b_ref, o_ref):
    o_ref[...] = jnp.dot(w_ref[...], p_ref[...],
                         preferred_element_type=jnp.float32) + b_ref[...]


def _c3_forward_matmul(x, w_dense, bias):
    n, c, h, wimg = x.shape
    oh, ow = h - K + 1, wimg - K + 1
    m = n * oh * ow
    kd = C_IN * K * K
    kd_pad = ((kd + 7) // 8) * 8                 # contraction dim -> x8
    m_pad = pl.cdiv(m, 128) * 128                # lane dim -> x128

    taps = jnp.stack([x[:, :, kh:kh + oh, kw:kw + ow]
                      for kh in range(K) for kw in range(K)], axis=0)
    p = taps.transpose(2, 0, 1, 3, 4).reshape(kd, m)       # rows = (c, kh, kw)
    p_pad = jnp.zeros((kd_pad, m_pad), jnp.bfloat16).at[:kd, :m].set(
        p.astype(jnp.bfloat16))
    w_pad = jnp.zeros((C_OUT, kd_pad), jnp.bfloat16).at[:, :kd].set(
        w_dense.reshape(C_OUT, kd).astype(jnp.bfloat16))
    b_col = bias.reshape(C_OUT, 1).astype(jnp.float32)

    y = pl.pallas_call(
        _c3_matmul_kernel,
        out_shape=jax.ShapeDtypeStruct((C_OUT, m_pad), jnp.float32),
        in_specs=[pl.BlockSpec(memory_space=pltpu.MemorySpace.VMEM)] * 3,
        out_specs=pl.BlockSpec(memory_space=pltpu.MemorySpace.VMEM),
    )(w_pad, p_pad, b_col)

    return y[:, :m].reshape(C_OUT, n, oh, ow).transpose(1, 0, 2, 3)


# ----- public entry point -----------------------------------------------------
def c3_forward(x, w_dense, bias):
    try:
        return jax.block_until_ready(_c3_forward_fused(x, w_dense, bias))
    except Exception:  # pragma: no cover - only if unaligned lane slices are
        #                 unsupported by the local Mosaic build.
        return jax.block_until_ready(_c3_forward_matmul(x, w_dense, bias))


# ----- deterministic parameter construction -----------------------------------
def init_params(key):
    """Dense (16,6,5,5) weights + (16,) bias, PyTorch-style uniform init,
    with zeros for input channels not in the connectivity table (exactly the
    per-group partially-connected Conv2d of the PyTorch module)."""
    w_dense = jnp.zeros((C_OUT, C_IN, K, K), dtype=jnp.float32)
    bias = jnp.zeros((C_OUT,), dtype=jnp.float32)
    for i, maps in enumerate(FEATURE_MAPS):
        key, kw_, kb_ = jax.random.split(key, 3)
        fan_in = len(maps) * K * K
        bound = 1.0 / jnp.sqrt(jnp.float32(fan_in))
        w_i = jax.random.uniform(
            kw_, (len(maps), K, K), jnp.float32, minval=-bound, maxval=bound)
        b_i = jax.random.uniform(kb_, (), jnp.float32, minval=-bound, maxval=bound)
        w_dense = w_dense.at[i, jnp.array(maps), :, :].set(w_i)
        bias = bias.at[i].set(b_i)
    return w_dense, bias


# ----- reference (pure JAX, f32) for sanity check ------------------------------
def c3_reference(x, w_dense, bias):
    y = jax.lax.conv_general_dilated(
        x, w_dense, window_strides=(1, 1), padding="VALID",
        dimension_numbers=("NCHW", "OIHW", "NCHW"),
    )
    return y + bias.reshape(1, C_OUT, 1, 1)


if __name__ == "__main__":
    key = jax.random.PRNGKey(0)
    k_x, k_p = jax.random.split(key)

    # LeNet-consistent input: batch=2, 6 channels, 16x16 spatial.
    x = jax.random.normal(k_x, (2, C_IN, 16, 16), dtype=jnp.float32)
    w_dense, bias = init_params(k_p)

    y = c3_forward(x, w_dense, bias)
    y_ref = c3_reference(x, w_dense, bias)

    assert y.shape == (2, C_OUT, 12, 12), y.shape
    # bf16 MXU inputs with f32 accumulation -> relaxed (but still tight) check.
    assert jnp.allclose(y, y_ref, atol=5e-2, rtol=2e-2), "mismatch vs reference"

    print("KERNEL_OK")
</pallas_src>

<mosaic_0001>
module attributes {stable_mosaic.version = 11 : i64} {
  func.func @kernel(%arg0: memref<8x640xf32, #tpu.memory_space<vmem>>, %arg1: memref<25x16x8xbf16, #tpu.memory_space<vmem>>, %arg2: memref<16x1xf32, #tpu.memory_space<vmem>>, %arg3: memref<16x512xf32, #tpu.memory_space<vmem>>) attributes {dimension_semantics = [], scalar_prefetch = 0 : i64, scratch_operands = 0 : i64, tpu.core_type = #tpu.core_type<tc>} {
    %c0 = arith.constant 0 : index
    %c0_0 = arith.constant 0 : index
    %0 = vector.load %arg0[%c0, %c0_0] : memref<8x640xf32, #tpu.memory_space<vmem>>, vector<8x640xf32>
    %cst = arith.constant 0.000000e+00 : f32
    %1 = vector.broadcast %cst : f32 to vector<16x512xf32>
    %2 = vector.extract_strided_slice %0 {offsets = [0, 0], sizes = [8, 512], strides = [1, 1]} : vector<8x640xf32> to vector<8x512xf32>
    %3 = arith.truncf %2 : vector<8x512xf32> to vector<8x512xbf16>
    %c0_1 = arith.constant 0 : index
    %c0_2 = arith.constant 0 : index
    %c0_3 = arith.constant 0 : index
    %4 = vector.load %arg1[%c0_1, %c0_2, %c0_3] : memref<25x16x8xbf16, #tpu.memory_space<vmem>>, vector<1x16x8xbf16>
    %5 = vector.shape_cast %4 : vector<1x16x8xbf16> to vector<16x8xbf16>
    %cst_4 = arith.constant dense<0.000000e+00> : vector<16x512xf32>
    %6 = tpu.matmul %5, %3, %cst_4 {dimension_numbers = #tpu.dot_dimension_numbers<[1], [0], [0], [1], [0, 0, 1, 1], [], []>} : vector<16x8xbf16>, vector<8x512xbf16>, vector<16x512xf32> -> vector<16x512xf32>
    %7 = arith.addf %1, %6 : vector<16x512xf32>
    %8 = vector.extract_strided_slice %0 {offsets = [0, 1], sizes = [8, 512], strides = [1, 1]} : vector<8x640xf32> to vector<8x512xf32>
    %9 = arith.truncf %8 : vector<8x512xf32> to vector<8x512xbf16>
    %c1 = arith.constant 1 : index
    %c0_5 = arith.constant 0 : index
    %c0_6 = arith.constant 0 : index
    %10 = vector.load %arg1[%c1, %c0_5, %c0_6] : memref<25x16x8xbf16, #tpu.memory_space<vmem>>, vector<1x16x8xbf16>
    %11 = vector.shape_cast %10 : vector<1x16x8xbf16> to vector<16x8xbf16>
    %cst_7 = arith.constant dense<0.000000e+00> : vector<16x512xf32>
    %12 = tpu.matmul %11, %9, %cst_7 {dimension_numbers = #tpu.dot_dimension_numbers<[1], [0], [0], [1], [0, 0, 1, 1], [], []>} : vector<16x8xbf16>, vector<8x512xbf16>, vector<16x512xf32> -> vector<16x512xf32>
    %13 = arith.addf %7, %12 : vector<16x512xf32>
    %14 = vector.extract_strided_slice %0 {offsets = [0, 2], sizes = [8, 512], strides = [1, 1]} : vector<8x640xf32> to vector<8x512xf32>
    %15 = arith.truncf %14 : vector<8x512xf32> to vector<8x512xbf16>
    %c2 = arith.constant 2 : index
    %c0_8 = arith.constant 0 : index
    %c0_9 = arith.constant 0 : index
    %16 = vector.load %arg1[%c2, %c0_8, %c0_9] : memref<25x16x8xbf16, #tpu.memory_space<vmem>>, vector<1x16x8xbf16>
    %17 = vector.shape_cast %16 : vector<1x16x8xbf16> to vector<16x8xbf16>
    %cst_10 = arith.constant dense<0.000000e+00> : vector<16x512xf32>
    %18 = tpu.matmul %17, %15, %cst_10 {dimension_numbers = #tpu.dot_dimension_numbers<[1], [0], [0], [1], [0, 0, 1, 1], [], []>} : vector<16x8xbf16>, vector<8x512xbf16>, vector<16x512xf32> -> vector<16x512xf32>
    %19 = arith.addf %13, %18 : vector<16x512xf32>
    %20 = vector.extract_strided_slice %0 {offsets = [0, 3], sizes = [8, 512], strides = [1, 1]} : vector<8x640xf32> to vector<8x512xf32>
    %21 = arith.truncf %20 : vector<8x512xf32> to vector<8x512xbf16>
    %c3 = arith.constant 3 : index
    %c0_11 = arith.constant 0 : index
    %c0_12 = arith.constant 0 : index
    %22 = vector.load %arg1[%c3, %c0_11, %c0_12] : memref<25x16x8xbf16, #tpu.memory_space<vmem>>, vector<1x16x8xbf16>
    %23 = vector.shape_cast %22 : vector<1x16x8xbf16> to vector<16x8xbf16>
    %cst_13 = arith.constant dense<0.000000e+00> : vector<16x512xf32>
    %24 = tpu.matmul %23, %21, %cst_13 {dimension_numbers = #tpu.dot_dimension_numbers<[1], [0], [0], [1], [0, 0, 1, 1], [], []>} : vector<16x8xbf16>, vector<8x512xbf16>, vector<16x512xf32> -> vector<16x512xf32>
    %25 = arith.addf %19, %24 : vector<16x512xf32>
    %26 = vector.extract_strided_slice %0 {offsets = [0, 4], sizes = [8, 512], strides = [1, 1]} : vector<8x640xf32> to vector<8x512xf32>
    %27 = arith.truncf %26 : vector<8x512xf32> to vector<8x512xbf16>
    %c4 = arith.constant 4 : index
    %c0_14 = arith.constant 0 : index
    %c0_15 = arith.constant 0 : index
    %28 = vector.load %arg1[%c4, %c0_14, %c0_15] : memref<25x16x8xbf16, #tpu.memory_space<vmem>>, vector<1x16x8xbf16>
    %29 = vector.shape_cast %28 : vector<1x16x8xbf16> to vector<16x8xbf16>
    %cst_16 = arith.constant dense<0.000000e+00> : vector<16x512xf32>
    %30 = tpu.matmul %29, %27, %cst_16 {dimension_numbers = #tpu.dot_dimension_numbers<[1], [0], [0], [1], [0, 0, 1, 1], [], []>} : vector<16x8xbf16>, vector<8x512xbf16>, vector<16x512xf32> -> vector<16x512xf32>
    %31 = arith.addf %25, %30 : vector<16x512xf32>
    %32 = vector.extract_strided_slice %0 {offsets = [0, 16], sizes = [8, 512], strides = [1, 1]} : vector<8x640xf32> to vector<8x512xf32>
    %33 = arith.truncf %32 : vector<8x512xf32> to vector<8x512xbf16>
    %c5 = arith.constant 5 : index
    %c0_17 = arith.constant 0 : index
    %c0_18 = arith.constant 0 : index
    %34 = vector.load %arg1[%c5, %c0_17, %c0_18] : memref<25x16x8xbf16, #tpu.memory_space<vmem>>, vector<1x16x8xbf16>
    %35 = vector.shape_cast %34 : vector<1x16x8xbf16> to vector<16x8xbf16>
    %cst_19 = arith.constant dense<0.000000e+00> : vector<16x512xf32>
    %36 = tpu.matmul %35, %33, %cst_19 {dimension_numbers = #tpu.dot_dimension_numbers<[1], [0], [0], [1], [0, 0, 1, 1], [], []>} : vector<16x8xbf16>, vector<8x512xbf16>, vector<16x512xf32> -> vector<16x512xf32>
    %37 = arith.addf %31, %36 : vector<16x512xf32>
    %38 = vector.extract_strided_slice %0 {offsets = [0, 17], sizes = [8, 512], strides = [1, 1]} : vector<8x640xf32> to vector<8x512xf32>
    %39 = arith.truncf %38 : vector<8x512xf32> to vector<8x512xbf16>
    %c6 = arith.constant 6 : index
    %c0_20 = arith.constant 0 : index
    %c0_21 = arith.constant 0 : index
    %40 = vector.load %arg1[%c6, %c0_20, %c0_21] : memref<25x16x8xbf16, #tpu.memory_space<vmem>>, vector<1x16x8xbf16>
    %41 = vector.shape_cast %40 : vector<1x16x8xbf16> to vector<16x8xbf16>
    %cst_22 = arith.constant dense<0.000000e+00> : vector<16x512xf32>
    %42 = tpu.matmul %41, %39, %cst_22 {dimension_numbers = #tpu.dot_dimension_numbers<[1], [0], [0], [1], [0, 0, 1, 1], [], []>} : vector<16x8xbf16>, vector<8x512xbf16>, vector<16x512xf32> -> vector<16x512xf32>
    %43 = arith.addf %37, %42 : vector<16x512xf32>
    %44 = vector.extract_strided_slice %0 {offsets = [0, 18], sizes = [8, 512], strides = [1, 1]} : vector<8x640xf32> to vector<8x512xf32>
    %45 = arith.truncf %44 : vector<8x512xf32> to vector<8x512xbf16>
    %c7 = arith.constant 7 : index
    %c0_23 = arith.constant 0 : index
    %c0_24 = arith.constant 0 : index
    %46 = vector.load %arg1[%c7, %c0_23, %c0_24] : memref<25x16x8xbf16, #tpu.memory_space<vmem>>, vector<1x16x8xbf16>
    %47 = vector.shape_cast %46 : vector<1x16x8xbf16> to vector<16x8xbf16>
    %cst_25 = arith.constant dense<0.000000e+00> : vector<16x512xf32>
    %48 = tpu.matmul %47, %45, %cst_25 {dimension_numbers = #tpu.dot_dimension_numbers<[1], [0], [0], [1], [0, 0, 1, 1], [], []>} : vector<16x8xbf16>, vector<8x512xbf16>, vector<16x512xf32> -> vector<16x512xf32>
    %49 = arith.addf %43, %48 : vector<16x512xf32>
    %50 = vector.extract_strided_slice %0 {offsets = [0, 19], sizes = [8, 512], strides = [1, 1]} : vector<8x640xf32> to vector<8x512xf32>
    %51 = arith.truncf %50 : vector<8x512xf32> to vector<8x512xbf16>
    %c8 = arith.constant 8 : index
    %c0_26 = arith.constant 0 : index
    %c0_27 = arith.constant 0 : index
    %52 = vector.load %arg1[%c8, %c0_26, %c0_27] : memref<25x16x8xbf16, #tpu.memory_space<vmem>>, vector<1x16x8xbf16>
    %53 = vector.shape_cast %52 : vector<1x16x8xbf16> to vector<16x8xbf16>
    %cst_28 = arith.constant dense<0.000000e+00> : vector<16x512xf32>
    %54 = tpu.matmul %53, %51, %cst_28 {dimension_numbers = #tpu.dot_dimension_numbers<[1], [0], [0], [1], [0, 0, 1, 1], [], []>} : vector<16x8xbf16>, vector<8x512xbf16>, vector<16x512xf32> -> vector<16x512xf32>
    %55 = arith.addf %49, %54 : vector<16x512xf32>
    %56 = vector.extract_strided_slice %0 {offsets = [0, 20], sizes = [8, 512], strides = [1, 1]} : vector<8x640xf32> to vector<8x512xf32>
    %57 = arith.truncf %56 : vector<8x512xf32> to vector<8x512xbf16>
    %c9 = arith.constant 9 : index
    %c0_29 = arith.constant 0 : index
    %c0_30 = arith.constant 0 : index
    %58 = vector.load %arg1[%c9, %c0_29, %c0_30] : memref<25x16x8xbf16, #tpu.memory_space<vmem>>, vector<1x16x8xbf16>
    %59 = vector.shape_cast %58 : vector<1x16x8xbf16> to vector<16x8xbf16>
    %cst_31 = arith.constant dense<0.000000e+00> : vector<16x512xf32>
    %60 = tpu.matmul %59, %57, %cst_31 {dimension_numbers = #tpu.dot_dimension_numbers<[1], [0], [0], [1], [0, 0, 1, 1], [], []>} : vector<16x8xbf16>, vector<8x512xbf16>, vector<16x512xf32> -> vector<16x512xf32>
    %61 = arith.addf %55, %60 : vector<16x512xf32>
    %62 = vector.extract_strided_slice %0 {offsets = [0, 32], sizes = [8, 512], strides = [1, 1]} : vector<8x640xf32> to vector<8x512xf32>
    %63 = arith.truncf %62 : vector<8x512xf32> to vector<8x512xbf16>
    %c10 = arith.constant 10 : index
    %c0_32 = arith.constant 0 : index
    %c0_33 = arith.constant 0 : index
    %64 = vector.load %arg1[%c10, %c0_32, %c0_33] : memref<25x16x8xbf16, #tpu.memory_space<vmem>>, vector<1x16x8xbf16>
    %65 = vector.shape_cast %64 : vector<1x16x8xbf16> to vector<16x8xbf16>
    %cst_34 = arith.constant dense<0.000000e+00> : vector<16x512xf32>
    %66 = tpu.matmul %65, %63, %cst_34 {dimension_numbers = #tpu.dot_dimension_numbers<[1], [0], [0], [1], [0, 0, 1, 1], [], []>} : vector<16x8xbf16>, vector<8x512xbf16>, vector<16x512xf32> -> vector<16x512xf32>
    %67 = arith.addf %61, %66 : vector<16x512xf32>
    %68 = vector.extract_strided_slice %0 {offsets = [0, 33], sizes = [8, 512], strides = [1, 1]} : vector<8x640xf32> to vector<8x512xf32>
    %69 = arith.truncf %68 : vector<8x512xf32> to vector<8x512xbf16>
    %c11 = arith.constant 11 : index
    %c0_35 = arith.constant 0 : index
    %c0_36 = arith.constant 0 : index
    %70 = vector.load %arg1[%c11, %c0_35, %c0_36] : memref<25x16x8xbf16, #tpu.memory_space<vmem>>, vector<1x16x8xbf16>
    %71 = vector.shape_cast %70 : vector<1x16x8xbf16> to vector<16x8xbf16>
    %cst_37 = arith.constant dense<0.000000e+00> : vector<16x512xf32>
    %72 = tpu.matmul %71, %69, %cst_37 {dimension_numbers = #tpu.dot_dimension_numbers<[1], [0], [0], [1], [0, 0, 1, 1], [], []>} : vector<16x8xbf16>, vector<8x512xbf16>, vector<16x512xf32> -> vector<16x512xf32>
    %73 = arith.addf %67, %72 : vector<16x512xf32>
    %74 = vector.extract_strided_slice %0 {offsets = [0, 34], sizes = [8, 512], strides = [1, 1]} : vector<8x640xf32> to vector<8x512xf32>
    %75 = arith.truncf %74 : vector<8x512xf32> to vector<8x512xbf16>
    %c12 = arith.constant 12 : index
    %c0_38 = arith.constant 0 : index
    %c0_39 = arith.constant 0 : index
    %76 = vector.load %arg1[%c12, %c0_38, %c0_39] : memref<25x16x8xbf16, #tpu.memory_space<vmem>>, vector<1x16x8xbf16>
    %77 = vector.shape_cast %76 : vector<1x16x8xbf16> to vector<16x8xbf16>
    %cst_40 = arith.constant dense<0.000000e+00> : vector<16x512xf32>
    %78 = tpu.matmul %77, %75, %cst_40 {dimension_numbers = #tpu.dot_dimension_numbers<[1], [0], [0], [1], [0, 0, 1, 1], [], []>} : vector<16x8xbf16>, vector<8x512xbf16>, vector<16x512xf32> -> vector<16x512xf32>
    %79 = arith.addf %73, %78 : vector<16x512xf32>
    %80 = vector.extract_strided_slice %0 {offsets = [0, 35], sizes = [8, 512], strides = [1, 1]} : vector<8x640xf32> to vector<8x512xf32>
    %81 = arith.truncf %80 : vector<8x512xf32> to vector<8x512xbf16>
    %c13 = arith.constant 13 : index
    %c0_41 = arith.constant 0 : index
    %c0_42 = arith.constant 0 : index
    %82 = vector.load %arg1[%c13, %c0_41, %c0_42] : memref<25x16x8xbf16, #tpu.memory_space<vmem>>, vector<1x16x8xbf16>
    %83 = vector.shape_cast %82 : vector<1x16x8xbf16> to vector<16x8xbf16>
    %cst_43 = arith.constant dense<0.000000e+00> : vector<16x512xf32>
    %84 = tpu.matmul %83, %81, %cst_43 {dimension_numbers = #tpu.dot_dimension_numbers<[1], [0], [0], [1], [0, 0, 1, 1], [], []>} : vector<16x8xbf16>, vector<8x512xbf16>, vector<16x512xf32> -> vector<16x512xf32>
    %85 = arith.addf %79, %84 : vector<16x512xf32>
    %86 = vector.extract_strided_slice %0 {offsets = [0, 36], sizes = [8, 512], strides = [1, 1]} : vector<8x640xf32> to vector<8x512xf32>
    %87 = arith.truncf %86 : vector<8x512xf32> to vector<8x512xbf16>
    %c14 = arith.constant 14 : index
    %c0_44 = arith.constant 0 : index
    %c0_45 = arith.constant 0 : index
    %88 = vector.load %arg1[%c14, %c0_44, %c0_45] : memref<25x16x8xbf16, #tpu.memory_space<vmem>>, vector<1x16x8xbf16>
    %89 = vector.shape_cast %88 : vector<1x16x8xbf16> to vector<16x8xbf16>
    %cst_46 = arith.constant dense<0.000000e+00> : vector<16x512xf32>
    %90 = tpu.matmul %89, %87, %cst_46 {dimension_numbers = #tpu.dot_dimension_numbers<[1], [0], [0], [1], [0, 0, 1, 1], [], []>} : vector<16x8xbf16>, vector<8x512xbf16>, vector<16x512xf32> -> vector<16x512xf32>
    %91 = arith.addf %85, %90 : vector<16x512xf32>
    %92 = vector.extract_strided_slice %0 {offsets = [0, 48], sizes = [8, 512], strides = [1, 1]} : vector<8x640xf32> to vector<8x512xf32>
    %93 = arith.truncf %92 : vector<8x512xf32> to vector<8x512xbf16>
    %c15 = arith.constant 15 : index
    %c0_47 = arith.constant 0 : index
    %c0_48 = arith.constant 0 : index
    %94 = vector.load %arg1[%c15, %c0_47, %c0_48] : memref<25x16x8xbf16, #tpu.memory_space<vmem>>, vector<1x16x8xbf16>
    %95 = vector.shape_cast %94 : vector<1x16x8xbf16> to vector<16x8xbf16>
    %cst_49 = arith.constant dense<0.000000e+00> : vector<16x512xf32>
    %96 = tpu.matmul %95, %93, %cst_49 {dimension_numbers = #tpu.dot_dimension_numbers<[1], [0], [0], [1], [0, 0, 1, 1], [], []>} : vector<16x8xbf16>, vector<8x512xbf16>, vector<16x512xf32> -> vector<16x512xf32>
    %97 = arith.addf %91, %96 : vector<16x512xf32>
    %98 = vector.extract_strided_slice %0 {offsets = [0, 49], sizes = [8, 512], strides = [1, 1]} : vector<8x640xf32> to vector<8x512xf32>
    %99 = arith.truncf %98 : vector<8x512xf32> to vector<8x512xbf16>
    %c16 = arith.constant 16 : index
    %c0_50 = arith.constant 0 : index
    %c0_51 = arith.constant 0 : index
    %100 = vector.load %arg1[%c16, %c0_50, %c0_51] : memref<25x16x8xbf16, #tpu.memory_space<vmem>>, vector<1x16x8xbf16>
    %101 = vector.shape_cast %100 : vector<1x16x8xbf16> to vector<16x8xbf16>
    %cst_52 = arith.constant dense<0.000000e+00> : vector<16x512xf32>
    %102 = tpu.matmul %101, %99, %cst_52 {dimension_numbers = #tpu.dot_dimension_numbers<[1], [0], [0], [1], [0, 0, 1, 1], [], []>} : vector<16x8xbf16>, vector<8x512xbf16>, vector<16x512xf32> -> vector<16x512xf32>
    %103 = arith.addf %97, %102 : vector<16x512xf32>
    %104 = vector.extract_strided_slice %0 {offsets = [0, 50], sizes = [8, 512], strides = [1, 1]} : vector<8x640xf32> to vector<8x512xf32>
    %105 = arith.truncf %104 : vector<8x512xf32> to vector<8x512xbf16>
    %c17 = arith.constant 17 : index
    %c0_53 = arith.constant 0 : index
    %c0_54 = arith.constant 0 : index
    %106 = vector.load %arg1[%c17, %c0_53, %c0_54] : memref<25x16x8xbf16, #tpu.memory_space<vmem>>, vector<1x16x8xbf16>
    %107 = vector.shape_cast %106 : vector<1x16x8xbf16> to vector<16x8xbf16>
    %cst_55 = arith.constant dense<0.000000e+00> : vector<16x512xf32>
    %108 = tpu.matmul %107, %105, %cst_55 {dimension_numbers = #tpu.dot_dimension_numbers<[1], [0], [0], [1], [0, 0, 1, 1], [], []>} : vector<16x8xbf16>, vector<8x512xbf16>, vector<16x512xf32> -> vector<16x512xf32>
    %109 = arith.addf %103, %108 : vector<16x512xf32>
    %110 = vector.extract_strided_slice %0 {offsets = [0, 51], sizes = [8, 512], strides = [1, 1]} : vector<8x640xf32> to vector<8x512xf32>
    %111 = arith.truncf %110 : vector<8x512xf32> to vector<8x512xbf16>
    %c18 = arith.constant 18 : index
    %c0_56 = arith.constant 0 : index
    %c0_57 = arith.constant 0 : index
    %112 = vector.load %arg1[%c18, %c0_56, %c0_57] : memref<25x16x8xbf16, #tpu.memory_space<vmem>>, vector<1x16x8xbf16>
    %113 = vector.shape_cast %112 : vector<1x16x8xbf16> to vector<16x8xbf16>
    %cst_58 = arith.constant dense<0.000000e+00> : vector<16x512xf32>
    %114 = tpu.matmul %113, %111, %cst_58 {dimension_numbers = #tpu.dot_dimension_numbers<[1], [0], [0], [1], [0, 0, 1, 1], [], []>} : vector<16x8xbf16>, vector<8x512xbf16>, vector<16x512xf32> -> vector<16x512xf32>
    %115 = arith.addf %109, %114 : vector<16x512xf32>
    %116 = vector.extract_strided_slice %0 {offsets = [0, 52], sizes = [8, 512], strides = [1, 1]} : vector<8x640xf32> to vector<8x512xf32>
    %117 = arith.truncf %116 : vector<8x512xf32> to vector<8x512xbf16>
    %c19 = arith.constant 19 : index
    %c0_59 = arith.constant 0 : index
    %c0_60 = arith.constant 0 : index
    %118 = vector.load %arg1[%c19, %c0_59, %c0_60] : memref<25x16x8xbf16, #tpu.memory_space<vmem>>, vector<1x16x8xbf16>
    %119 = vector.shape_cast %118 : vector<1x16x8xbf16> to vector<16x8xbf16>
    %cst_61 = arith.constant dense<0.000000e+00> : vector<16x512xf32>
    %120 = tpu.matmul %119, %117, %cst_61 {dimension_numbers = #tpu.dot_dimension_numbers<[1], [0], [0], [1], [0, 0, 1, 1], [], []>} : vector<16x8xbf16>, vector<8x512xbf16>, vector<16x512xf32> -> vector<16x512xf32>
    %121 = arith.addf %115, %120 : vector<16x512xf32>
    %122 = vector.extract_strided_slice %0 {offsets = [0, 64], sizes = [8, 512], strides = [1, 1]} : vector<8x640xf32> to vector<8x512xf32>
    %123 = arith.truncf %122 : vector<8x512xf32> to vector<8x512xbf16>
    %c20 = arith.constant 20 : index
    %c0_62 = arith.constant 0 : index
    %c0_63 = arith.constant 0 : index
    %124 = vector.load %arg1[%c20, %c0_62, %c0_63] : memref<25x16x8xbf16, #tpu.memory_space<vmem>>, vector<1x16x8xbf16>
    %125 = vector.shape_cast %124 : vector<1x16x8xbf16> to vector<16x8xbf16>
    %cst_64 = arith.constant dense<0.000000e+00> : vector<16x512xf32>
    %126 = tpu.matmul %125, %123, %cst_64 {dimension_numbers = #tpu.dot_dimension_numbers<[1], [0], [0], [1], [0, 0, 1, 1], [], []>} : vector<16x8xbf16>, vector<8x512xbf16>, vector<16x512xf32> -> vector<16x512xf32>
    %127 = arith.addf %121, %126 : vector<16x512xf32>
    %128 = vector.extract_strided_slice %0 {offsets = [0, 65], sizes = [8, 512], strides = [1, 1]} : vector<8x640xf32> to vector<8x512xf32>
    %129 = arith.truncf %128 : vector<8x512xf32> to vector<8x512xbf16>
    %c21 = arith.constant 21 : index
    %c0_65 = arith.constant 0 : index
    %c0_66 = arith.constant 0 : index
    %130 = vector.load %arg1[%c21, %c0_65, %c0_66] : memref<25x16x8xbf16, #tpu.memory_space<vmem>>, vector<1x16x8xbf16>
    %131 = vector.shape_cast %130 : vector<1x16x8xbf16> to vector<16x8xbf16>
    %cst_67 = arith.constant dense<0.000000e+00> : vector<16x512xf32>
    %132 = tpu.matmul %131, %129, %cst_67 {dimension_numbers = #tpu.dot_dimension_numbers<[1], [0], [0], [1], [0, 0, 1, 1], [], []>} : vector<16x8xbf16>, vector<8x512xbf16>, vector<16x512xf32> -> vector<16x512xf32>
    %133 = arith.addf %127, %132 : vector<16x512xf32>
    %134 = vector.extract_strided_slice %0 {offsets = [0, 66], sizes = [8, 512], strides = [1, 1]} : vector<8x640xf32> to vector<8x512xf32>
    %135 = arith.truncf %134 : vector<8x512xf32> to vector<8x512xbf16>
    %c22 = arith.constant 22 : index
    %c0_68 = arith.constant 0 : index
    %c0_69 = arith.constant 0 : index
    %136 = vector.load %arg1[%c22, %c0_68, %c0_69] : memref<25x16x8xbf16, #tpu.memory_space<vmem>>, vector<1x16x8xbf16>
    %137 = vector.shape_cast %136 : vector<1x16x8xbf16> to vector<16x8xbf16>
    %cst_70 = arith.constant dense<0.000000e+00> : vector<16x512xf32>
    %138 = tpu.matmul %137, %135, %cst_70 {dimension_numbers = #tpu.dot_dimension_numbers<[1], [0], [0], [1], [0, 0, 1, 1], [], []>} : vector<16x8xbf16>, vector<8x512xbf16>, vector<16x512xf32> -> vector<16x512xf32>
    %139 = arith.addf %133, %138 : vector<16x512xf32>
    %140 = vector.extract_strided_slice %0 {offsets = [0, 67], sizes = [8, 512], strides = [1, 1]} : vector<8x640xf32> to vector<8x512xf32>
    %141 = arith.truncf %140 : vector<8x512xf32> to vector<8x512xbf16>
    %c23 = arith.constant 23 : index
    %c0_71 = arith.constant 0 : index
    %c0_72 = arith.constant 0 : index
    %142 = vector.load %arg1[%c23, %c0_71, %c0_72] : memref<25x16x8xbf16, #tpu.memory_space<vmem>>, vector<1x16x8xbf16>
    %143 = vector.shape_cast %142 : vector<1x16x8xbf16> to vector<16x8xbf16>
    %cst_73 = arith.constant dense<0.000000e+00> : vector<16x512xf32>
    %144 = tpu.matmul %143, %141, %cst_73 {dimension_numbers = #tpu.dot_dimension_numbers<[1], [0], [0], [1], [0, 0, 1, 1], [], []>} : vector<16x8xbf16>, vector<8x512xbf16>, vector<16x512xf32> -> vector<16x512xf32>
    %145 = arith.addf %139, %144 : vector<16x512xf32>
    %146 = vector.extract_strided_slice %0 {offsets = [0, 68], sizes = [8, 512], strides = [1, 1]} : vector<8x640xf32> to vector<8x512xf32>
    %147 = arith.truncf %146 : vector<8x512xf32> to vector<8x512xbf16>
    %c24 = arith.constant 24 : index
    %c0_74 = arith.constant 0 : index
    %c0_75 = arith.constant 0 : index
    %148 = vector.load %arg1[%c24, %c0_74, %c0_75] : memref<25x16x8xbf16, #tpu.memory_space<vmem>>, vector<1x16x8xbf16>
    %149 = vector.shape_cast %148 : vector<1x16x8xbf16> to vector<16x8xbf16>
    %cst_76 = arith.constant dense<0.000000e+00> : vector<16x512xf32>
    %150 = tpu.matmul %149, %147, %cst_76 {dimension_numbers = #tpu.dot_dimension_numbers<[1], [0], [0], [1], [0, 0, 1, 1], [], []>} : vector<16x8xbf16>, vector<8x512xbf16>, vector<16x512xf32> -> vector<16x512xf32>
    %151 = arith.addf %145, %150 : vector<16x512xf32>
    %c0_77 = arith.constant 0 : index
    %c0_78 = arith.constant 0 : index
    %152 = vector.load %arg2[%c0_77, %c0_78] : memref<16x1xf32, #tpu.memory_space<vmem>>, vector<16x1xf32>
    %153 = vector.broadcast %152 : vector<16x1xf32> to vector<16x512xf32>
    %154 = arith.addf %151, %153 : vector<16x512xf32>
    %c0_79 = arith.constant 0 : index
    %c0_80 = arith.constant 0 : index
    %155 = vector.load %arg3[%c0_79, %c0_80] : memref<16x512xf32, #tpu.memory_space<vmem>>, vector<16x512xf32>
    tpu.vector_store %arg3[%c0_79, %c0_80], %154 {strides = array<i32>} : memref<16x512xf32, #tpu.memory_space<vmem>>, vector<16x512xf32>,
    return
  }
}

module attributes {stable_mosaic.version = 11 : i64} {
  func.func @_c3_matmul_kernel(%arg0: memref<16x152xbf16, #tpu.memory_space<vmem>>, %arg1: memref<152x384xbf16, #tpu.memory_space<vmem>>, %arg2: memref<16x1xf32, #tpu.memory_space<vmem>>, %arg3: memref<16x384xf32, #tpu.memory_space<vmem>>) attributes {dimension_semantics = [], scalar_prefetch = 0 : i64, scratch_operands = 0 : i64, tpu.core_type = #tpu.core_type<tc>} {
    %c0 = arith.constant 0 : index
    %c0_0 = arith.constant 0 : index
    %0 = vector.load %arg0[%c0, %c0_0] : memref<16x152xbf16, #tpu.memory_space<vmem>>, vector<16x152xbf16>
    %c0_1 = arith.constant 0 : index
    %c0_2 = arith.constant 0 : index
    %1 = vector.load %arg1[%c0_1, %c0_2] : memref<152x384xbf16, #tpu.memory_space<vmem>>, vector<152x384xbf16>
    %cst = arith.constant dense<0.000000e+00> : vector<16x384xf32>
    %2 = tpu.matmul %0, %1, %cst {dimension_numbers = #tpu.dot_dimension_numbers<[1], [0], [0], [1], [0, 0, 1, 1], [], []>} : vector<16x152xbf16>, vector<152x384xbf16>, vector<16x384xf32> -> vector<16x384xf32>
    %c0_3 = arith.constant 0 : index
    %c0_4 = arith.constant 0 : index
    %3 = vector.load %arg2[%c0_3, %c0_4] : memref<16x1xf32, #tpu.memory_space<vmem>>, vector<16x1xf32>
    %4 = vector.broadcast %3 : vector<16x1xf32> to vector<16x384xf32>
    %5 = arith.addf %2, %4 : vector<16x384xf32>
    %c0_5 = arith.constant 0 : index
    %c0_6 = arith.constant 0 : index
    %6 = vector.load %arg3[%c0_5, %c0_6] : memref<16x384xf32, #tpu.memory_space<vmem>>, vector<16x384xf32>
    tpu.vector_store %arg3[%c0_5, %c0_6], %5 {strides = array<i32>} : memref<16x384xf32, #tpu.memory_space<vmem>>, vector<16x384xf32>,
    return
  }
}

</mosaic_0001>

<bundles_post_ra>
// kernel: tpu_custom_call.1
= control target key start
LH: loop header
LB: loop body
LE: loop exit
PB: predicated region body
PF: predicated region fallthrough
CT: control target
= control target key end

     0   :  { %s3789_s20 = smov 127   ;;  %v3790_v9 = vmov 0   ;;  %s3791_s23 = smov 126   ;;  %s4388_s0 = inlined_call_operand.vmem [shape: f32[8,640], index: 0, kind: input, shape index: {}]   ;;  %s4389_s1 = inlined_call_operand.vmem [shape: bf16[25,16,8], index: 1, kind: input, shape index: {}]   ;;  %s4390_s2 = inlined_call_operand.vmem [shape: f32[16,1], index: 2, kind: input, shape index: {}]   ;;  %s4391_s3 = inlined_call_operand.hbm [shape: f32[16,512], index: 3, kind: output, shape index: {}]  }
   0x1   :  { %v18_v0 = vld [vmem:[%s4388_s0 + $0x10] sm:$0xff]  ;;  %v16_v1 = vld [vmem:[%s4388_s0] sm:$0xff]  ;;  %v19_v2 = vld [vmem:[%s4388_s0 + $0x18] sm:$0xff]  ;;  %105 = vmatprep.mubr.bf16.mxu0 %v3790_v9  ;;  %148 = vmatprep.mubr.bf16.mxu1 %v3790_v9 }
   0x2   :  { %v3846_v3 = vpack.c.bf16 %v18_v0, %v18_v0  ;;  %v3848_v4 = vpack.c.bf16 %v16_v1, %v16_v1  ;;  %v17_v5 = vld [vmem:[%s4388_s0 + $0x8] sm:$0xff]  ;;  %v3855_v6 = vpack.c.bf16 %v19_v2, %v19_v2  ;;  %v20_v8 = vld [vmem:[%s4388_s0 + $0x20] sm:$0xff]  ;;  %3738 = vset.pattern.permute.xlu0 %v3790_v9  ;;  %3739 = vset.pattern.permute.xlu1 %v3790_v9  ;;  %s3792_s0 = smov 125  }
   0x3   :  { %v3857_v7 = vpack.c.bf16 %v17_v5, %v17_v5  ;;  %v3868_v10 = vpack.c.bf16 %v20_v8, %v20_v8 }
   0x4   :  { %45 = vrot.lane.b32.xlu1 %v3846_v3, %s3789_s20  ;;  %41 = vrot.lane.b32.xlu0 %v3848_v4, %s3789_s20 }
   0x8   :  { %47 = vrot.lane.b32.xlu1 %v3855_v6, %s3789_s20  ;;  %43 = vrot.lane.b32.xlu0 %v3857_v7, %s3789_s20 }
   0xc   :  { %49 = vrot.lane.b32.xlu0 %v3868_v10, %s3789_s20  ;;  %273 = vrot.lane.b32.xlu1 %v3848_v4, %s3791_s23 }
  0x10   :  { %275 = vrot.lane.b32.xlu0 %v3857_v7, %s3791_s23  ;;  %277 = vrot.lane.b32.xlu1 %v3846_v3, %s3791_s23 }
  0x14   :  { %279 = vrot.lane.b32.xlu0 %v3855_v6, %s3791_s23  ;;  %281 = vrot.lane.b32.xlu1 %v3868_v10, %s3791_s23 }
  0x18   :  { %405 = vrot.lane.b32.xlu0 %v3848_v4, %s3792_s0  ;;  %407 = vrot.lane.b32.xlu1 %v3857_v7, %s3792_s0 }
  0x19   :  { %8 = vsyncpa [#allocation3], 0  ;;  %s3793_s24 = smov 124   ;;  %s3794_s25 = smov 112   ;;  %vm51_vm0 = vcmask 1039360   ;;  %vm60_vm1 = vcmask 1043456  }
  0x1a   :  { %s3795_s26 = smov 111   ;;  %s3796_s27 = smov 110   ;;  %v3740_v18 = vld [vmem:[%s4389_s1 + $0x8] sm:$0xff]   ;;  %vm56_vm2 = vcmask 64512   ;;  %v168_v22 = vsel %vm60_vm1, %v3848_v4, 0  ;;  %vm283_vm3 = vcmask 1031168  }
  0x1b   :  { %s3797_s28 = smov 109   ;;  %s3798_s29 = smov 108   ;;  %v174_v25 = vsel %vm60_vm1, %v3846_v3, 0  ;;  %v3741_v33 = vld [vmem:[%s4389_s1] sm:$0xff]   ;;  %vm415_vm4 = vcmask 1022976   ;;  %v3742_v46 = vld [vmem:[%s4389_s1 + $0x10] sm:$0xff]  }
  0x1c   :  { %409 = vrot.lane.b32.xlu0 %v3846_v3, %s3792_s0  ;;  %411 = vrot.lane.b32.xlu1 %v3855_v6, %s3792_s0  ;;  %s3799_s30 = smov 96   ;;  %s3800_s4 = smov 95   ;;  %vm547_vm5 = vcmask 1014784   ;;  %v3743_v59 = vld [vmem:[%s4389_s1 + $0x18] sm:$0xff]   ;;  %vm679_vm6 = vcmask 916480   ;;  %vm811_vm7 = vcmask 908288  }
  0x1d   :  { %s3801_s5 = smov 94   ;;  %s3802_s8 = smov 93   ;;  %vm943_vm8 = vcmask 900096   ;;  %vm1075_vm9 = vcmask 891904   ;;  %vm1207_vm10 = vcmask 883712   ;;  %vm1339_vm11 = vcmask 785408  }
  0x1e   :  { %s3803_s9 = smov 92   ;;  %s3804_s12 = smov 80   ;;  %vm1471_vm12 = vcmask 777216   ;;  %vm1603_vm13 = vcmask 769024   ;;  %vm1735_vm14 = vcmask 760832   ;;  %vm1867_vm15 = vcmask 752640  }
  0x1f   :  { %s3805_s15 = smov 79   ;;  %s3806_s18 = smov 78  }
  0x20   :  { %413 = vrot.lane.b32.xlu0 %v3868_v10, %s3792_s0  ;;  %537 = vrot.lane.b32.xlu1 %v3848_v4, %s3793_s24  ;;  %s3807_s21 = smov 77   ;;  %s3808_s0 = smov 76  }
  0x21   :  { %s3812_s6 = smov 61  }
  0x24   :  { %539 = vrot.lane.b32.xlu0 %v3857_v7, %s3793_s24  ;;  %541 = vrot.lane.b32.xlu1 %v3846_v3, %s3793_s24 }
  0x28   :  { %543 = vrot.lane.b32.xlu0 %v3855_v6, %s3793_s24  ;;  %545 = vrot.lane.b32.xlu1 %v3868_v10, %s3793_s24  ;;  %s3809_s24 = smov 64  }
  0x2c   :  { %669 = vrot.lane.b32.xlu0 %v3848_v4, %s3794_s25  ;;  %671 = vrot.lane.b32.xlu1 %v3857_v7, %s3794_s25 }
  0x30   :  { %673 = vrot.lane.b32.xlu0 %v3846_v3, %s3794_s25  ;;  %675 = vrot.lane.b32.xlu1 %v3855_v6, %s3794_s25 }
  0x34   :  { %677 = vrot.lane.b32.xlu0 %v3868_v10, %s3794_s25  ;;  %801 = vrot.lane.b32.xlu1 %v3848_v4, %s3795_s26 }
  0x38   :  { %803 = vrot.lane.b32.xlu0 %v3857_v7, %s3795_s26  ;;  %805 = vrot.lane.b32.xlu1 %v3846_v3, %s3795_s26 }
  0x3c   :  { %807 = vrot.lane.b32.xlu0 %v3855_v6, %s3795_s26  ;;  %809 = vrot.lane.b32.xlu1 %v3868_v10, %s3795_s26 }
  0x40   :  { %933 = vrot.lane.b32.xlu0 %v3848_v4, %s3796_s27  ;;  %935 = vrot.lane.b32.xlu1 %v3857_v7, %s3796_s27 }
  0x44   :  { %937 = vrot.lane.b32.xlu0 %v3846_v3, %s3796_s27  ;;  %939 = vrot.lane.b32.xlu1 %v3855_v6, %s3796_s27 }
  0x48   :  { %941 = vrot.lane.b32.xlu0 %v3868_v10, %s3796_s27  ;;  %1065 = vrot.lane.b32.xlu1 %v3848_v4, %s3797_s28  ;;  %s3810_s27 = smov 63  }
  0x4c   :  { %1067 = vrot.lane.b32.xlu0 %v3857_v7, %s3797_s28  ;;  %1069 = vrot.lane.b32.xlu1 %v3846_v3, %s3797_s28 }
  0x50   :  { %1071 = vrot.lane.b32.xlu0 %v3855_v6, %s3797_s28  ;;  %1073 = vrot.lane.b32.xlu1 %v3868_v10, %s3797_s28 }
  0x54   :  { %1197 = vrot.lane.b32.xlu0 %v3848_v4, %s3798_s29  ;;  %1199 = vrot.lane.b32.xlu1 %v3857_v7, %s3798_s29 }
  0x58   :  { %1201 = vrot.lane.b32.xlu0 %v3846_v3, %s3798_s29  ;;  %1203 = vrot.lane.b32.xlu1 %v3855_v6, %s3798_s29 }
  0x5c   :  { %1205 = vrot.lane.b32.xlu0 %v3868_v10, %s3798_s29  ;;  %1329 = vrot.lane.b32.xlu1 %v3848_v4, %s3799_s30 }
  0x60   :  { %1331 = vrot.lane.b32.xlu0 %v3857_v7, %s3799_s30  ;;  %1333 = vrot.lane.b32.xlu1 %v3846_v3, %s3799_s30 }
  0x64   :  { %1335 = vrot.lane.b32.xlu0 %v3855_v6, %s3799_s30  ;;  %1337 = vrot.lane.b32.xlu1 %v3868_v10, %s3799_s30  ;;  %s3811_s30 = smov 62  }
  0x68   :  { %1461 = vrot.lane.b32.xlu0 %v3848_v4, %s3800_s4  ;;  %1463 = vrot.lane.b32.xlu1 %v3857_v7, %s3800_s4 }
  0x6c   :  { %1465 = vrot.lane.b32.xlu0 %v3846_v3, %s3800_s4  ;;  %1467 = vrot.lane.b32.xlu1 %v3855_v6, %s3800_s4 }
  0x70   :  { %1469 = vrot.lane.b32.xlu0 %v3868_v10, %s3800_s4  ;;  %1593 = vrot.lane.b32.xlu1 %v3848_v4, %s3801_s5 }
  0x74   :  { %1595 = vrot.lane.b32.xlu0 %v3857_v7, %s3801_s5  ;;  %1597 = vrot.lane.b32.xlu1 %v3846_v3, %s3801_s5 }
  0x76   :  { %v46_v11 = vpop.permute.xlu1 %45  ;;  %v42_v12 = vpop.permute.xlu0 %41 }
  0x78   :  { %1599 = vrot.lane.b32.xlu0 %v3855_v6, %s3801_s5  ;;  %1601 = vrot.lane.b32.xlu1 %v3868_v10, %s3801_s5 }
  0x7a   :  { %v48_v13 = vpop.permute.xlu1 %47  ;;  %v44_v14 = vpop.permute.xlu0 %43 }
  0x7b   :  { %v53_v15 = vsel %vm51_vm0, %v44_v14, %v46_v11  ;;  %v52_v16 = vsel %vm51_vm0, %v42_v12, %v44_v14  ;;  %v54_v19 = vsel %vm51_vm0, %v46_v11, %v48_v13  ;;  %v3744_v14 = vld [vmem:[%s4389_s1 + $0x20] sm:$0xff]  }
  0x7c   :  { %3348 = vmatprep.subr.msk.bf16.mxu0 %vm60_vm1, %v53_v15  ;;  %v62_v17 = vsel %vm60_vm1, %v52_v16, 0  ;;  %1725 = vrot.lane.b32.xlu0 %v3848_v4, %s3802_s8  ;;  %v68_v24 = vsel %vm60_vm1, %v54_v19, 0 }
  0x7d   :  { %74 = vmatpush1.bf16.msra.mxu0 %v62_v17  ;;  %1727 = vrot.lane.b32.xlu1 %v3857_v7, %s3802_s8 }
  0x7e   :  { %v50_v20 = vpop.permute.xlu0 %49  ;;  %3353 = vmatprep.subr.msk.bf16.mxu0 %vm60_vm1, %v3857_v7  ;;  %v274_v21 = vpop.permute.xlu1 %273 }
  0x7f   :  { %v55_v23 = vsel %vm51_vm0, %v48_v13, %v50_v20  ;;  %vm1999_vm0 = vcmask 654336  }
  0x80   :  { %3349 = vmatmul.mubr.msk.bf16.vlgmr.msra.gmra.mrb[0].mxu0 %vm56_vm2, %v3740_v18  ;;  %3350 = vmatprep.subr.msk.bf16.mxu1 %vm60_vm1, %v55_v23 }
  0x81   :  { %117 = vmatpush1.bf16.msra.mxu1 %v68_v24  ;;  %180 = vmatpush1.bf16.msra.mxu0 %v168_v22 }
  0x82   :  { %3355 = vmatprep.subr.msk.bf16.mxu1 %vm60_vm1, %v3855_v6  ;;  %v276_v26 = vpop.permute.xlu0 %275  ;;  %v278_v27 = vpop.permute.xlu1 %277  ;;  %211 = vmatprep.mubr.bf16.mxu0 %v3790_v9 }
  0x83   :  { %v285_v28 = vsel %vm283_vm3, %v276_v26, %v278_v27  ;;  %1729 = vrot.lane.b32.xlu0 %v3846_v3, %s3802_s8  ;;  %1731 = vrot.lane.b32.xlu1 %v3855_v6, %s3802_s8  ;;  %v284_v31 = vsel %vm283_vm3, %v274_v21, %v276_v26 }
  0x84   :  { %3351 = vmatmul.mubr.msk.bf16.vlgmr.msra.gmra.mrb[0].mxu1 %vm56_vm2, %v3740_v18  ;;  %3360 = vmatprep.subr.msk.bf16.mxu0 %vm60_vm1, %v285_v28  ;;  %v292_v34 = vsel %vm60_vm1, %v284_v31, 0 }
  0x85   :  { %223 = vmatpush1.bf16.msra.mxu1 %v174_v25  ;;  %254 = vmatprep.mubr.bf16.mxu1 %v3790_v9 }
  0x86   :  { %v280_v29 = vpop.permute.xlu0 %279  ;;  %v282_v30 = vpop.permute.xlu1 %281 }
  0x87   :  { %v287_v32 = vsel %vm283_vm3, %v280_v29, %v282_v30  ;;  %1733 = vrot.lane.b32.xlu0 %v3868_v10, %s3802_s8  ;;  %1857 = vrot.lane.b32.xlu1 %v3848_v4, %s3803_s9  ;;  %v286_v37 = vsel %vm283_vm3, %v278_v27, %v280_v29  ;;  %v3745_v27 = vld [vmem:[%s4389_s1 + $0x28] sm:$0xff]   ;;  %vm2131_vm3 = vcmask 646144  }
  0x88   :  { %3362 = vmatprep.subr.msk.bf16.mxu1 %vm60_vm1, %v287_v32  ;;  %v298_v38 = vsel %vm60_vm1, %v286_v37, 0 }
  0x8a   :  { %v406_v35 = vpop.permute.xlu0 %405  ;;  %v408_v36 = vpop.permute.xlu1 %407 }
  0x8b   :  { %1859 = vrot.lane.b32.xlu0 %v3857_v7, %s3803_s9  ;;  %1861 = vrot.lane.b32.xlu1 %v3846_v3, %s3803_s9  ;;  %v416_v44 = vsel %vm415_vm4, %v406_v35, %v408_v36 }
  0x8c   :  { %3354 = vmatmul.mubr.msk.bf16.vlgmr.msra.gmra.mrb[0].mxu0 %vm56_vm2, %v3741_v33  ;;  %v424_v47 = vsel %vm60_vm1, %v416_v44, 0 }
  0x8d   :  { %304 = vmatpush1.bf16.msra.mxu0 %v292_v34  ;;  %335 = vmatprep.mubr.bf16.mxu0 %v3790_v9 }
  0x8e   :  { %v410_v39 = vpop.permute.xlu0 %409  ;;  %v412_v40 = vpop.permute.xlu1 %411 }
  0x8f   :  { %v417_v41 = vsel %vm415_vm4, %v408_v36, %v410_v39  ;;  %1863 = vrot.lane.b32.xlu0 %v3855_v6, %s3803_s9  ;;  %1865 = vrot.lane.b32.xlu1 %v3868_v10, %s3803_s9  ;;  %v418_v50 = vsel %vm415_vm4, %v410_v39, %v412_v40  ;;  %s3813_s9 = smov 60  }
  0x90   :  { %3356 = vmatmul.mubr.msk.bf16.vlgmr.msra.gmra.mrb[0].mxu1 %vm56_vm2, %v3741_v33  ;;  %3367 = vmatprep.subr.msk.bf16.mxu0 %vm60_vm1, %v417_v41  ;;  %v430_v52 = vsel %vm60_vm1, %v418_v50, 0 }
  0x91   :  { %347 = vmatpush1.bf16.msra.mxu1 %v298_v38  ;;  %378 = vmatprep.mubr.bf16.mxu1 %v3790_v9 }
  0x92   :  { %v414_v42 = vpop.permute.xlu0 %413  ;;  %v538_v43 = vpop.permute.xlu1 %537 }
  0x93   :  { %v419_v45 = vsel %vm415_vm4, %v412_v40, %v414_v42  ;;  %1989 = vrot.lane.b32.xlu0 %v3848_v4, %s3804_s12  ;;  %1991 = vrot.lane.b32.xlu1 %v3857_v7, %s3804_s12  ;;  %v3746_v40 = vld [vmem:[%s4389_s1 + $0x30] sm:$0xff]   ;;  %vm2263_vm4 = vcmask 637952  }
  0x94   :  { %3369 = vmatprep.subr.msk.bf16.mxu1 %vm60_vm1, %v419_v45 }
  0x96   :  { %v540_v48 = vpop.permute.xlu0 %539  ;;  %v542_v49 = vpop.permute.xlu1 %541 }
  0x97   :  { %v549_v51 = vsel %vm547_vm5, %v540_v48, %v542_v49  ;;  %1993 = vrot.lane.b32.xlu0 %v3846_v3, %s3804_s12  ;;  %1995 = vrot.lane.b32.xlu1 %v3855_v6, %s3804_s12  ;;  %v548_v58 = vsel %vm547_vm5, %v538_v43, %v540_v48 }
  0x98   :  { %3361 = vmatmul.mubr.msk.bf16.vlgmr.msra.gmra.mrb[0].mxu0 %vm56_vm2, %v3742_v46  ;;  %v556_v60 = vsel %vm60_vm1, %v548_v58, 0 }
  0x99   :  { %436 = vmatpush1.bf16.msra.mxu0 %v424_v47  ;;  %467 = vmatprep.mubr.bf16.mxu0 %v3790_v9 }
  0x9a   :  { %v544_v53 = vpop.permute.xlu0 %543  ;;  %3374 = vmatprep.subr.msk.bf16.mxu0 %vm60_vm1, %v549_v51  ;;  %v546_v54 = vpop.permute.xlu1 %545 }
  0x9b   :  { %v551_v55 = vsel %vm547_vm5, %v544_v53, %v546_v54  ;;  %1997 = vrot.lane.b32.xlu0 %v3868_v10, %s3804_s12  ;;  %2121 = vrot.lane.b32.xlu1 %v3848_v4, %s3805_s15  ;;  %v550_v63 = vsel %vm547_vm5, %v542_v49, %v544_v53  ;;  %v3747_v53 = vld [vmem:[%s4389_s1 + $0x38] sm:$0xff]   ;;  %vm2395_vm5 = vcmask 629760  }
  0x9c   :  { %3363 = vmatmul.mubr.msk.bf16.vlgmr.msra.gmra.mrb[0].mxu1 %vm56_vm2, %v3742_v46  ;;  %v562_v1 = vsel %vm60_vm1, %v550_v63, 0 }
  0x9d   :  { %479 = vmatpush1.bf16.msra.mxu1 %v430_v52  ;;  %510 = vmatprep.mubr.bf16.mxu1 %v3790_v9 }
  0x9e   :  { %3376 = vmatprep.subr.msk.bf16.mxu1 %vm60_vm1, %v551_v55  ;;  %v670_v56 = vpop.permute.xlu0 %669  ;;  %v672_v57 = vpop.permute.xlu1 %671 }
  0x9f   :  { %2123 = vrot.lane.b32.xlu0 %v3857_v7, %s3805_s15  ;;  %2125 = vrot.lane.b32.xlu1 %v3846_v3, %s3805_s15  ;;  %v680_v13 = vsel %vm679_vm6, %v670_v56, %v672_v57 }
  0xa0   :  { %v688_v15 = vsel %vm60_vm1, %v680_v13, 0 }
  0xa2   :  { %v674_v61 = vpop.permute.xlu0 %673  ;;  %v676_v62 = vpop.permute.xlu1 %675 }
  0xa3   :  { %v681_v0 = vsel %vm679_vm6, %v672_v57, %v674_v61  ;;  %2127 = vrot.lane.b32.xlu0 %v3855_v6, %s3805_s15  ;;  %2129 = vrot.lane.b32.xlu1 %v3868_v10, %s3805_s15  ;;  %v682_v18 = vsel %vm679_vm6, %v674_v61, %v676_v62  ;;  %s3814_s15 = smov [#allocation2]  }
  0xa4   :  { %3368 = vmatmul.mubr.msk.bf16.vlgmr.msra.gmra.mrb[0].mxu0 %vm56_vm2, %v3743_v59  ;;  %v694_v20 = vsel %vm60_vm1, %v682_v18, 0  ;;  %s3334_s16 = sshll.u32 %s3814_s15, 4  ;;  %s3335_s16 = int_to_ptr.vmem [resolvable:$true] %s3334_s16 }
  0xa5   :  { %568 = vmatpush1.bf16.msra.mxu0 %v556_v60  ;;  %599 = vmatprep.mubr.bf16.mxu0 %v3790_v9  ;;  %p3770_p1 = scmp.lt.s32.totalorder %s3335_s16, %s3335_s16 }
  0xa6   :  { %3381 = vmatprep.subr.msk.bf16.mxu0 %vm60_vm1, %v681_v0  ;;  %v678_v2 = vpop.permute.xlu0 %677  ;;  %v802_v5 = vpop.permute.xlu1 %801 }
  0xa7   :  { %v683_v8 = vsel %vm679_vm6, %v676_v62, %v678_v2  ;;  %2253 = vrot.lane.b32.xlu0 %v3848_v4, %s3806_s18  ;;  %2255 = vrot.lane.b32.xlu1 %v3857_v7, %s3806_s18  ;;  %v3748_v2 = vld [vmem:[%s4389_s1 + $0x40] sm:$0xff]   ;;  %vm2527_vm6 = vcmask 621568  }
  0xa8   :  { %3370 = vmatmul.mubr.msk.bf16.vlgmr.msra.gmra.mrb[0].mxu1 %vm56_vm2, %v3743_v59 }
  0xa9   :  { %611 = vmatpush1.bf16.msra.mxu1 %v562_v1  ;;  %642 = vmatprep.mubr.bf16.mxu1 %v3790_v9 }
  0xaa   :  { %3383 = vmatprep.subr.msk.bf16.mxu1 %vm60_vm1, %v683_v8  ;;  %v804_v11 = vpop.permute.xlu0 %803  ;;  %v806_v12 = vpop.permute.xlu1 %805 }
  0xab   :  { %2257 = vrot.lane.b32.xlu0 %v3846_v3, %s3806_s18  ;;  %2259 = vrot.lane.b32.xlu1 %v3855_v6, %s3806_s18  ;;  %v813_v19 = vsel %vm811_vm7, %v804_v11, %v806_v12  ;;  %v812_v26 = vsel %vm811_vm7, %v802_v5, %v804_v11 }
  0xac   :  { %v820_v28 = vsel %vm60_vm1, %v812_v26, 0 }
  0xae   :  { %v808_v16 = vpop.permute.xlu0 %807  ;;  %v810_v17 = vpop.permute.xlu1 %809 }
  0xaf   :  { %2261 = vrot.lane.b32.xlu0 %v3868_v10, %s3806_s18  ;;  %2385 = vrot.lane.b32.xlu1 %v3848_v4, %s3807_s21  ;;  %v815_v23 = vsel %vm811_vm7, %v808_v16, %v810_v17  ;;  %v814_v31 = vsel %vm811_vm7, %v806_v12, %v808_v16  ;;  %vm2659_vm7 = vcmask 523264  }
  0xb0   :  { %3375 = vmatmul.mubr.msk.bf16.vlgmr.msra.gmra.mrb[0].mxu0 %vm56_vm2, %v3744_v14  ;;  %v826_v33 = vsel %vm60_vm1, %v814_v31, 0  ;;  %v3750_v31 = vld [vmem:[%s4389_s1 + $0x50] sm:$0xff]  }
  0xb1   :  { %700 = vmatpush1.bf16.msra.mxu0 %v688_v15  ;;  %731 = vmatprep.mubr.bf16.mxu0 %v3790_v9 }
  0xb2   :  { %3388 = vmatprep.subr.msk.bf16.mxu0 %vm60_vm1, %v813_v19  ;;  %v934_v21 = vpop.permute.xlu0 %933  ;;  %v936_v22 = vpop.permute.xlu1 %935 }
  0xb3   :  { %2387 = vrot.lane.b32.xlu0 %v3857_v7, %s3807_s21  ;;  %2389 = vrot.lane.b32.xlu1 %v3846_v3, %s3807_s21  ;;  %v944_v39 = vsel %vm943_vm8, %v934_v21, %v936_v22  ;;  %v3749_v21 = vld [vmem:[%s4389_s1 + $0x48] sm:$0xff]  }
  0xb4   :  { %3377 = vmatmul.mubr.msk.bf16.vlgmr.msra.gmra.mrb[0].mxu1 %vm56_vm2, %v3744_v14  ;;  %v952_v41 = vsel %vm60_vm1, %v944_v39, 0 }
  0xb5   :  { %743 = vmatpush1.bf16.msra.mxu1 %v694_v20  ;;  %774 = vmatprep.mubr.bf16.mxu1 %v3790_v9 }
  0xb6   :  { %3390 = vmatprep.subr.msk.bf16.mxu1 %vm60_vm1, %v815_v23  ;;  %v938_v24 = vpop.permute.xlu0 %937  ;;  %v940_v25 = vpop.permute.xlu1 %939 }
  0xb7   :  { %2391 = vrot.lane.b32.xlu0 %v3855_v6, %s3807_s21  ;;  %2393 = vrot.lane.b32.xlu1 %v3868_v10, %s3807_s21  ;;  %v945_v32 = vsel %vm943_vm8, %v936_v22, %v938_v24  ;;  %v946_v44 = vsel %vm943_vm8, %v938_v24, %v940_v25 }
  0xb8   :  { %v958_v46 = vsel %vm60_vm1, %v946_v44, 0 }
  0xba   :  { %v942_v29 = vpop.permute.xlu0 %941  ;;  %v1066_v30 = vpop.permute.xlu1 %1065 }
  0xbb   :  { %2517 = vrot.lane.b32.xlu0 %v3848_v4, %s3808_s0  ;;  %2519 = vrot.lane.b32.xlu1 %v3857_v7, %s3808_s0  ;;  %v947_v36 = vsel %vm943_vm8, %v940_v25, %v942_v29  ;;  %vm2791_vm8 = vcmask 515072  }
  0xbc   :  { %3382 = vmatmul.mubr.msk.bf16.vlgmr.msra.gmra.mrb[0].mxu0 %vm56_vm2, %v3745_v27 }
  0xbd   :  { %832 = vmatpush1.bf16.msra.mxu0 %v820_v28  ;;  %863 = vmatprep.mubr.bf16.mxu0 %v3790_v9 }
  0xbe   :  { %3395 = vmatprep.subr.msk.bf16.mxu0 %vm60_vm1, %v945_v32  ;;  %v1068_v34 = vpop.permute.xlu0 %1067  ;;  %v1070_v35 = vpop.permute.xlu1 %1069 }
  0xbf   :  { %2521 = vrot.lane.b32.xlu0 %v3846_v3, %s3808_s0  ;;  %2523 = vrot.lane.b32.xlu1 %v3855_v6, %s3808_s0  ;;  %v1077_v45 = vsel %vm1075_vm9, %v1068_v34, %v1070_v35  ;;  %v1076_v52 = vsel %vm1075_vm9, %v1066_v30, %v1068_v34 }
  0xc0   :  { %3384 = vmatmul.mubr.msk.bf16.vlgmr.msra.gmra.mrb[0].mxu1 %vm56_vm2, %v3745_v27  ;;  %v1084_v54 = vsel %vm60_vm1, %v1076_v52, 0 }
  0xc1   :  { %875 = vmatpush1.bf16.msra.mxu1 %v826_v33  ;;  %906 = vmatprep.mubr.bf16.mxu1 %v3790_v9 }
  0xc2   :  { %3397 = vmatprep.subr.msk.bf16.mxu1 %vm60_vm1, %v947_v36  ;;  %v1072_v37 = vpop.permute.xlu0 %1071  ;;  %v1074_v38 = vpop.permute.xlu1 %1073 }
  0xc3   :  { %2525 = vrot.lane.b32.xlu0 %v3868_v10, %s3808_s0  ;;  %2649 = vrot.lane.b32.xlu1 %v3848_v4, %s3809_s24  ;;  %v1079_v49 = vsel %vm1075_vm9, %v1072_v37, %v1074_v38  ;;  %v1078_v57 = vsel %vm1075_vm9, %v1070_v35, %v1072_v37  ;;  %vm2923_vm9 = vcmask 506880  }
  0xc4   :  { %v1090_v59 = vsel %vm60_vm1, %v1078_v57, 0 }
  0xc6   :  { %v1198_v42 = vpop.permute.xlu0 %1197  ;;  %v1200_v43 = vpop.permute.xlu1 %1199 }
  0xc7   :  { %2651 = vrot.lane.b32.xlu0 %v3857_v7, %s3809_s24  ;;  %2653 = vrot.lane.b32.xlu1 %v3846_v3, %s3809_s24  ;;  %v1208_v1 = vsel %vm1207_vm10, %v1198_v42, %v1200_v43 }
  0xc8   :  { %3389 = vmatmul.mubr.msk.bf16.vlgmr.msra.gmra.mrb[0].mxu0 %vm56_vm2, %v3746_v40  ;;  %v1216_v5 = vsel %vm60_vm1, %v1208_v1, 0  ;;  %v3753_v1 = vld [vmem:[%s4389_s1 + $0x68] sm:$0xff]  }
  0xc9   :  { %964 = vmatpush1.bf16.msra.mxu0 %v952_v41  ;;  %995 = vmatprep.mubr.bf16.mxu0 %v3790_v9 }
  0xca   :  { %3402 = vmatprep.subr.msk.bf16.mxu0 %vm60_vm1, %v1077_v45  ;;  %v1202_v47 = vpop.permute.xlu0 %1201  ;;  %v1204_v48 = vpop.permute.xlu1 %1203 }
  0xcb   :  { %2655 = vrot.lane.b32.xlu0 %v3855_v6, %s3809_s24  ;;  %2657 = vrot.lane.b32.xlu1 %v3868_v10, %s3809_s24  ;;  %v1209_v58 = vsel %vm1207_vm10, %v1200_v43, %v1202_v47  ;;  %v1210_v12 = vsel %vm1207_vm10, %v1202_v47, %v1204_v48 }
  0xcc   :  { %3391 = vmatmul.mubr.msk.bf16.vlgmr.msra.gmra.mrb[0].mxu1 %vm56_vm2, %v3746_v40  ;;  %v1222_v14 = vsel %vm60_vm1, %v1210_v12, 0  ;;  %v3751_v40 = vld [vmem:[%s4389_s1 + $0x58] sm:$0xff]  }
  0xcd   :  { %1007 = vmatpush1.bf16.msra.mxu1 %v958_v46  ;;  %1038 = vmatprep.mubr.bf16.mxu1 %v3790_v9 }
  0xce   :  { %3404 = vmatprep.subr.msk.bf16.mxu1 %vm60_vm1, %v1079_v49  ;;  %v1206_v50 = vpop.permute.xlu0 %1205  ;;  %v1330_v51 = vpop.permute.xlu1 %1329 }
  0xcf   :  { %2781 = vrot.lane.b32.xlu0 %v3848_v4, %s3810_s27  ;;  %2783 = vrot.lane.b32.xlu1 %v3857_v7, %s3810_s27  ;;  %v1211_v62 = vsel %vm1207_vm10, %v1204_v48, %v1206_v50  ;;  %vm3055_vm10 = vcmask 498688  }
  0xd2   :  { %v1332_v55 = vpop.permute.xlu0 %1331  ;;  %v1334_v56 = vpop.permute.xlu1 %1333 }
  0xd3   :  { %2785 = vrot.lane.b32.xlu0 %v3846_v3, %s3810_s27  ;;  %2787 = vrot.lane.b32.xlu1 %v3855_v6, %s3810_s27  ;;  %v1341_v13 = vsel %vm1339_vm11, %v1332_v55, %v1334_v56  ;;  %v1340_v20 = vsel %vm1339_vm11, %v1330_v51, %v1332_v55 }
  0xd4   :  { %3396 = vmatmul.mubr.msk.bf16.vlgmr.msra.gmra.mrb[0].mxu0 %vm56_vm2, %v3747_v53  ;;  %v1348_v22 = vsel %vm60_vm1, %v1340_v20, 0  ;;  %v3301_v20 = vld [vmem:[%s4390_s2] sm:$0xff] }
  0xd5   :  { %1096 = vmatpush1.bf16.msra.mxu0 %v1084_v54  ;;  %1127 = vmatprep.mubr.bf16.mxu0 %v3790_v9 }
  0xd6   :  { %3409 = vmatprep.subr.msk.bf16.mxu0 %vm60_vm1, %v1209_v58  ;;  %v1336_v60 = vpop.permute.xlu0 %1335  ;;  %v1338_v61 = vpop.permute.xlu1 %1337 }
  0xd7   :  { %2789 = vrot.lane.b32.xlu0 %v3868_v10, %s3810_s27  ;;  %2913 = vrot.lane.b32.xlu1 %v3848_v4, %s3811_s30  ;;  %v1343_v17 = vsel %vm1339_vm11, %v1336_v60, %v1338_v61  ;;  %v1342_v24 = vsel %vm1339_vm11, %v1334_v56, %v1336_v60  ;;  %vm3187_vm11 = vcmask 490496  }
  0xd8   :  { %3398 = vmatmul.mubr.msk.bf16.vlgmr.msra.gmra.mrb[0].mxu1 %vm56_vm2, %v3747_v53  ;;  %v1354_v27 = vsel %vm60_vm1, %v1342_v24, 0  ;;  %v3752_v53 = vld [vmem:[%s4389_s1 + $0x60] sm:$0xff]  }
  0xd9   :  { %1139 = vmatpush1.bf16.msra.mxu1 %v1090_v59  ;;  %1170 = vmatprep.mubr.bf16.mxu1 %v3790_v9 }
  0xda   :  { %3411 = vmatprep.subr.msk.bf16.mxu1 %vm60_vm1, %v1211_v62  ;;  %v1462_v63 = vpop.permute.xlu0 %1461  ;;  %v1464_v0 = vpop.permute.xlu1 %1463 }
  0xdb   :  { %2915 = vrot.lane.b32.xlu0 %v3857_v7, %s3811_s30  ;;  %2917 = vrot.lane.b32.xlu1 %v3846_v3, %s3811_s30 }
  0xde   :  { %v1466_v8 = vpop.permute.xlu0 %1465  ;;  %v1468_v11 = vpop.permute.xlu1 %1467 }
  0xdf   :  { %2919 = vrot.lane.b32.xlu0 %v3855_v6, %s3811_s30  ;;  %2921 = vrot.lane.b32.xlu1 %v3868_v10, %s3811_s30  ;;  %v1473_v25 = vsel %vm1471_vm12, %v1464_v0, %v1466_v8  ;;  %v1474_v33 = vsel %vm1471_vm12, %v1466_v8, %v1468_v11 }
  0xe0   :  { %3403 = vmatmul.mubr.msk.bf16.vlgmr.msra.gmra.mrb[0].mxu0 %vm56_vm2, %v3748_v2  ;;  %v1486_v35 = vsel %vm60_vm1, %v1474_v33, 0 }
  0xe1   :  { %1228 = vmatpush1.bf16.msra.mxu0 %v1216_v5  ;;  %1259 = vmatprep.mubr.bf16.mxu0 %v3790_v9 }
  0xe2   :  { %3416 = vmatprep.subr.msk.bf16.mxu0 %vm60_vm1, %v1341_v13  ;;  %v1470_v15 = vpop.permute.xlu0 %1469  ;;  %v4124_v16 = vpop.permute.xlu1 %1593 }
  0xe3   :  { %3045 = vrot.lane.b32.xlu0 %v3848_v4, %s3812_s6  ;;  %3047 = vrot.lane.b32.xlu1 %v3857_v7, %s3812_s6  ;;  %v1475_v28 = vsel %vm1471_vm12, %v1468_v11, %v1470_v15 }
  0xe4   :  { %3405 = vmatmul.mubr.msk.bf16.vlgmr.msra.gmra.mrb[0].mxu1 %vm56_vm2, %v3748_v2 }
  0xe5   :  { %1271 = vmatpush1.bf16.msra.mxu1 %v1222_v14  ;;  %1302 = vmatprep.mubr.bf16.mxu1 %v3790_v9 }
  0xe6   :  { %3418 = vmatprep.subr.msk.bf16.mxu1 %vm60_vm1, %v1343_v17  ;;  %v1596_v18 = vpop.permute.xlu0 %1595  ;;  %v1598_v19 = vpop.permute.xlu1 %1597 }
  0xe7   :  { %3049 = vrot.lane.b32.xlu0 %v3846_v3, %s3812_s6  ;;  %3051 = vrot.lane.b32.xlu1 %v3855_v6, %s3812_s6  ;;  %v1605_v34 = vsel %vm1603_vm13, %v1596_v18, %v1598_v19  ;;  %v1604_v39 = vsel %vm1603_vm13, %v4124_v16, %v1596_v18 }
  0xe8   :  { %v1612_v43 = vsel %vm60_vm1, %v1604_v39, 0 }
  0xea   :  { %v1600_v23 = vpop.permute.xlu0 %1599  ;;  %v1602_v26 = vpop.permute.xlu1 %1601 }
  0xeb   :  { %3053 = vrot.lane.b32.xlu0 %v3868_v10, %s3812_s6  ;;  %3177 = vrot.lane.b32.xlu1 %v3848_v4, %s3813_s9  ;;  %v1472_v4 = vsel %vm1471_vm12, %v1462_v63, %v1464_v0  ;;  %v1607_v36 = vsel %vm1603_vm13, %v1600_v23, %v1602_v26  ;;  %v1606_v44 = vsel %vm1603_vm13, %v1598_v19, %v1600_v23  ;;  %v3754_v19 = vld [vmem:[%s4389_s1 + $0x70] sm:$0xff]  }
  0xec   :  { %3410 = vmatmul.mubr.msk.bf16.vlgmr.msra.gmra.mrb[0].mxu0 %vm56_vm2, %v3749_v21  ;;  %v1480_v32 = vsel %vm60_vm1, %v1472_v4, 0  ;;  %v1618_v48 = vsel %vm60_vm1, %v1606_v44, 0 }
  0xed   :  { %1360 = vmatpush1.bf16.msra.mxu0 %v1348_v22  ;;  %1391 = vmatprep.mubr.bf16.mxu0 %v3790_v9 }
  0xee   :  { %3423 = vmatprep.subr.msk.bf16.mxu0 %vm60_vm1, %v1473_v25  ;;  %v1726_v29 = vpop.permute.xlu0 %1725 }
  0xef   :  { %v1728_v30 = vpop.permute.xlu1 %1727  ;;  %3179 = vrot.lane.b32.xlu0 %v3857_v7, %s3813_s9  ;;  %3181 = vrot.lane.b32.xlu1 %v3846_v3, %s3813_s9 }
  0xf0   :  { %3412 = vmatmul.mubr.msk.bf16.vlgmr.msra.gmra.mrb[0].mxu1 %vm56_vm2, %v3749_v21  ;;  %v1736_v52 = vsel %vm1735_vm14, %v1726_v29, %v1728_v30  ;;  %v3302_v21 = vld [vmem:[%s4390_s2 + $0x8] sm:$0xff] }
  0xf1   :  { %1403 = vmatpush1.bf16.msra.mxu1 %v1354_v27  ;;  %1434 = vmatprep.mubr.bf16.mxu1 %v3790_v9  ;;  %v1744_v56 = vsel %vm60_vm1, %v1736_v52, 0 }
  0xf2   :  { %3425 = vmatprep.subr.msk.bf16.mxu1 %vm60_vm1, %v1475_v28 }
  0xf3   :  { %3183 = vrot.lane.b32.xlu0 %v3855_v6, %s3813_s9  ;;  %3185 = vrot.lane.b32.xlu1 %v3868_v10, %s3813_s9 }
  0xf5   :  { %v1730_v7 = vpop.permute.xlu0 %1729  ;;  %v1732_v3 = vpop.permute.xlu1 %1731 }
  0xf6   :  { %v1737_v45 = vsel %vm1735_vm14, %v1728_v30, %v1730_v7  ;;  %v1738_v57 = vsel %vm1735_vm14, %v1730_v7, %v1732_v3 }
  0xf7   :  { %v1750_v60 = vsel %vm60_vm1, %v1738_v57, 0  ;;  %3305 = vperm.xlu0 %3738, %v3301_v20   ;;  %3310 = vperm.xlu1 %3739, %v3302_v21  }
  0xf8   :  { %3417 = vmatmul.mubr.msk.bf16.vlgmr.msra.gmra.mrb[0].mxu0 %vm56_vm2, %v3750_v31 }
  0xf9   :  { %1492 = vmatpush1.bf16.msra.mxu0 %v1480_v32  ;;  %1523 = vmatprep.mubr.bf16.mxu0 %v3790_v9  ;;  %v1734_v6 = vpop.permute.xlu0 %1733  ;;  %v1858_v10 = vpop.permute.xlu1 %1857 }
  0xfa   :  { %3430 = vmatprep.subr.msk.bf16.mxu0 %vm60_vm1, %v1605_v34  ;;  %v1739_v49 = vsel %vm1735_vm14, %v1732_v3, %v1734_v6 }
  0xfc   :  { %3419 = vmatmul.mubr.msk.bf16.vlgmr.msra.gmra.mrb[0].mxu1 %vm56_vm2, %v3750_v31  ;;  %v3755_v31 = vld [vmem:[%s4389_s1 + $0x78] sm:$0xff]  }
  0xfd   :  { %1535 = vmatpush1.bf16.msra.mxu1 %v1486_v35  ;;  %1566 = vmatprep.mubr.bf16.mxu1 %v3790_v9  ;;  %v1860_v37 = vpop.permute.xlu0 %1859  ;;  %v1862_v38 = vpop.permute.xlu1 %1861 }
  0xfe   :  { %3432 = vmatprep.subr.msk.bf16.mxu1 %vm60_vm1, %v1607_v36  ;;  %v1869_v58 = vsel %vm1867_vm15, %v1860_v37, %v1862_v38  ;;  %v1868_v0 = vsel %vm1867_vm15, %v1858_v10, %v1860_v37 }
  0xff   :  { %v1876_v5 = vsel %vm60_vm1, %v1868_v0, 0 }
 0x101   :  { %v1864_v41 = vpop.permute.xlu0 %1863  ;;  %v1866_v42 = vpop.permute.xlu1 %1865 }
 0x102   :  { %v1871_v62 = vsel %vm1867_vm15, %v1864_v41, %v1866_v42  ;;  %v1870_v8 = vsel %vm1867_vm15, %v1862_v38, %v1864_v41  ;;  %v3756_v38 = vld [vmem:[%s4389_s1 + $0x80] sm:$0xff]  }
 0x103   :  { %v1882_v14 = vsel %vm60_vm1, %v1870_v8, 0 }
 0x104   :  { %3424 = vmatmul.mubr.msk.bf16.vlgmr.msra.gmra.mrb[0].mxu0 %vm56_vm2, %v3751_v40 }
 0x105   :  { %1624 = vmatpush1.bf16.msra.mxu0 %v1612_v43  ;;  %1655 = vmatprep.mubr.bf16.mxu0 %v3790_v9  ;;  %v1990_v46 = vpop.permute.xlu0 %1989  ;;  %v1992_v47 = vpop.permute.xlu1 %1991 }
 0x106   :  { %3437 = vmatprep.subr.msk.bf16.mxu0 %vm60_vm1, %v1737_v45  ;;  %v2000_v18 = vsel %vm1999_vm0, %v1990_v46, %v1992_v47 }
 0x107   :  { %v2008_v22 = vsel %vm60_vm1, %v2000_v18, 0 }
 0x108   :  { %3426 = vmatmul.mubr.msk.bf16.vlgmr.msra.gmra.mrb[0].mxu1 %vm56_vm2, %v3751_v40 }
 0x109   :  { %1667 = vmatpush1.bf16.msra.mxu1 %v1618_v48  ;;  %1698 = vmatprep.mubr.bf16.mxu1 %v3790_v9  ;;  %v1994_v50 = vpop.permute.xlu0 %1993  ;;  %v1996_v51 = vpop.permute.xlu1 %1995 }
 0x10a   :  { %3439 = vmatprep.subr.msk.bf16.mxu1 %vm60_vm1, %v1739_v49  ;;  %v2001_v11 = vsel %vm1999_vm0, %v1992_v47, %v1994_v50  ;;  %v2002_v23 = vsel %vm1999_vm0, %v1994_v50, %v1996_v51  ;;  %v3757_v49 = vld [vmem:[%s4389_s1 + $0x88] sm:$0xff]  }
 0x10b   :  { %v2014_v27 = vsel %vm60_vm1, %v2002_v23, 0 }
 0x10d   :  { %v1998_v54 = vpop.permute.xlu0 %1997  ;;  %v4190_v55 = vpop.permute.xlu1 %2121 }
 0x10e   :  { %v2003_v15 = vsel %vm1999_vm0, %v1996_v51, %v1998_v54 }
 0x110   :  { %3431 = vmatmul.mubr.msk.bf16.vlgmr.msra.gmra.mrb[0].mxu0 %vm56_vm2, %v3752_v53 }
 0x111   :  { %1756 = vmatpush1.bf16.msra.mxu0 %v1744_v56  ;;  %1787 = vmatprep.mubr.bf16.mxu0 %v3790_v9  ;;  %v2124_v59 = vpop.permute.xlu0 %2123  ;;  %v2126_v61 = vpop.permute.xlu1 %2125 }
 0x112   :  { %3444 = vmatprep.subr.msk.bf16.mxu0 %vm60_vm1, %v1869_v58  ;;  %v2133_v24 = vsel %vm2131_vm3, %v2124_v59, %v2126_v61  ;;  %v2132_v4 = vsel %vm2131_vm3, %v4190_v55, %v2124_v59 }
 0x113   :  { %v2140_v7 = vsel %vm60_vm1, %v2132_v4, 0 }
 0x114   :  { %3433 = vmatmul.mubr.msk.bf16.vlgmr.msra.gmra.mrb[0].mxu1 %vm56_vm2, %v3752_v53 }
 0x115   :  { %1799 = vmatpush1.bf16.msra.mxu1 %v1750_v60  ;;  %1830 = vmatprep.mubr.bf16.mxu1 %v3790_v9  ;;  %v2128_v63 = vpop.permute.xlu0 %2127  ;;  %v2130_v2 = vpop.permute.xlu1 %2129  ;;  %v3758_v60 = vld [vmem:[%s4389_s1 + $0x90] sm:$0xff]  }
 0x116   :  { %3446 = vmatprep.subr.msk.bf16.mxu1 %vm60_vm1, %v1871_v62  ;;  %v2135_v28 = vsel %vm2131_vm3, %v2128_v63, %v2130_v2  ;;  %v2134_v32 = vsel %vm2131_vm3, %v2126_v61, %v2128_v63 }
 0x117   :  { %v2146_v6 = vsel %vm60_vm1, %v2134_v32, 0 }
 0x119   :  { %v2254_v12 = vpop.permute.xlu0 %2253  ;;  %v2256_v13 = vpop.permute.xlu1 %2255 }
 0x11a   :  { %v2264_v37 = vsel %vm2263_vm4, %v2254_v12, %v2256_v13 }
 0x11b   :  { %v2272_v39 = vsel %vm60_vm1, %v2264_v37, 0 }
 0x11c   :  { %3438 = vmatmul.mubr.msk.bf16.vlgmr.msra.gmra.mrb[0].mxu0 %vm56_vm2, %v3753_v1 }
 0x11d   :  { %1888 = vmatpush1.bf16.msra.mxu0 %v1876_v5  ;;  %1919 = vmatprep.mubr.bf16.mxu0 %v3790_v9  ;;  %v2258_v16 = vpop.permute.xlu0 %2257  ;;  %v2260_v17 = vpop.permute.xlu1 %2259 }
 0x11e   :  { %3451 = vmatprep.subr.msk.bf16.mxu0 %vm60_vm1, %v2001_v11  ;;  %v2265_v33 = vsel %vm2263_vm4, %v2256_v13, %v2258_v16  ;;  %v2266_v42 = vsel %vm2263_vm4, %v2258_v16, %v2260_v17  ;;  %v3759_v13 = vld [vmem:[%s4389_s1 + $0x98] sm:$0xff]  }
 0x11f   :  { %v2278_v44 = vsel %vm60_vm1, %v2266_v42, 0 }
 0x120   :  { %3440 = vmatmul.mubr.msk.bf16.vlgmr.msra.gmra.mrb[0].mxu1 %vm56_vm2, %v3753_v1 }
 0x121   :  { %1931 = vmatpush1.bf16.msra.mxu1 %v1882_v14  ;;  %1962 = vmatprep.mubr.bf16.mxu1 %v3790_v9  ;;  %v2262_v25 = vpop.permute.xlu0 %2261  ;;  %v2386_v26 = vpop.permute.xlu1 %2385 }
 0x122   :  { %3453 = vmatprep.subr.msk.bf16.mxu1 %vm60_vm1, %v2003_v15  ;;  %v2267_v10 = vsel %vm2263_vm4, %v2260_v17, %v2262_v25  ;;  %v3760_v25 = vld [vmem:[%s4389_s1 + $0xa0] sm:$0xff]  }
 0x125   :  { %v2388_v29 = vpop.permute.xlu0 %2387  ;;  %v2390_v30 = vpop.permute.xlu1 %2389 }
 0x126   :  { %v2397_v43 = vsel %vm2395_vm5, %v2388_v29, %v2390_v30  ;;  %v2396_v48 = vsel %vm2395_vm5, %v2386_v26, %v2388_v29 }
 0x127   :  { %v2404_v51 = vsel %vm60_vm1, %v2396_v48, 0 }
 0x128   :  { %3445 = vmatmul.mubr.msk.bf16.vlgmr.msra.gmra.mrb[0].mxu0 %vm56_vm2, %v3754_v19 }
 0x129   :  { %2020 = vmatpush1.bf16.msra.mxu0 %v2008_v22  ;;  %2051 = vmatprep.mubr.bf16.mxu0 %v3790_v9  ;;  %v2392_v3 = vpop.permute.xlu0 %2391  ;;  %v2394_v34 = vpop.permute.xlu1 %2393 }
 0x12a   :  { %3458 = vmatprep.subr.msk.bf16.mxu0 %vm60_vm1, %v2133_v24  ;;  %v2399_v45 = vsel %vm2395_vm5, %v2392_v3, %v2394_v34  ;;  %v2398_v53 = vsel %vm2395_vm5, %v2390_v30, %v2392_v3  ;;  %v3761_v34 = vld [vmem:[%s4389_s1 + $0xa8] sm:$0xff]  }
 0x12b   :  { %v2410_v55 = vsel %vm60_vm1, %v2398_v53, 0 }
 0x12c   :  { %3447 = vmatmul.mubr.msk.bf16.vlgmr.msra.gmra.mrb[0].mxu1 %vm56_vm2, %v3754_v19 }
 0x12d   :  { %2063 = vmatpush1.bf16.msra.mxu1 %v2014_v27  ;;  %2094 = vmatprep.mubr.bf16.mxu1 %v3790_v9  ;;  %v2518_v35 = vpop.permute.xlu0 %2517  ;;  %v2520_v36 = vpop.permute.xlu1 %2519 }
 0x12e   :  { %3460 = vmatprep.subr.msk.bf16.mxu1 %vm60_vm1, %v2135_v28  ;;  %v2528_v59 = vsel %vm2527_vm6, %v2518_v35, %v2520_v36 }
 0x12f   :  { %v2536_v63 = vsel %vm60_vm1, %v2528_v59, 0 }
 0x131   :  { %v2522_v40 = vpop.permute.xlu0 %2521  ;;  %v2524_v41 = vpop.permute.xlu1 %2523 }
 0x132   :  { %v2529_v54 = vsel %vm2527_vm6, %v2520_v36, %v2522_v40  ;;  %v2530_v0 = vsel %vm2527_vm6, %v2522_v40, %v2524_v41 }
 0x133   :  { %v2542_v2 = vsel %vm60_vm1, %v2530_v0, 0 }
 0x134   :  { %3452 = vmatmul.mubr.msk.bf16.vlgmr.msra.gmra.mrb[0].mxu0 %vm56_vm2, %v3755_v31 }
 0x135   :  { %2152 = vmatpush1.bf16.msra.mxu0 %v2140_v7  ;;  %2183 = vmatprep.mubr.bf16.mxu0 %v3790_v9  ;;  %v2526_v46 = vpop.permute.xlu0 %2525  ;;  %v2650_v47 = vpop.permute.xlu1 %2649 }
 0x136   :  { %3465 = vmatprep.subr.msk.bf16.mxu0 %vm60_vm1, %v2265_v33  ;;  %v2531_v57 = vsel %vm2527_vm6, %v2524_v41, %v2526_v46 }
 0x138   :  { %3454 = vmatmul.mubr.msk.bf16.vlgmr.msra.gmra.mrb[0].mxu1 %vm56_vm2, %v3755_v31 }
 0x139   :  { %2195 = vmatpush1.bf16.msra.mxu1 %v2146_v6  ;;  %2226 = vmatprep.mubr.bf16.mxu1 %v3790_v9  ;;  %v2652_v50 = vpop.permute.xlu0 %2651  ;;  %v2654_v52 = vpop.permute.xlu1 %2653 }
 0x13a   :  { %3467 = vmatprep.subr.msk.bf16.mxu1 %vm60_vm1, %v2267_v10  ;;  %v2661_v1 = vsel %vm2659_vm7, %v2652_v50, %v2654_v52  ;;  %v2660_v12 = vsel %vm2659_vm7, %v2650_v47, %v2652_v50 }
 0x13b   :  { %v2668_v16 = vsel %vm60_vm1, %v2660_v12, 0 }
 0x13d   :  { %v2656_v56 = vpop.permute.xlu0 %2655  ;;  %v2658_v58 = vpop.permute.xlu1 %2657 }
 0x13e   :  { %v2663_v11 = vsel %vm2659_vm7, %v2656_v56, %v2658_v58  ;;  %v2662_v17 = vsel %vm2659_vm7, %v2654_v52, %v2656_v56  ;;  %v3763_v52 = vld [vmem:[%s4389_s1 + $0xb8] sm:$0xff]   ;;  %v3764_v56 = vld [vmem:[%s4389_s1 + $0xc0] sm:$0xff]  }
 0x13f   :  { %v2674_v20 = vsel %vm60_vm1, %v2662_v17, 0 }
 0x140   :  { %3459 = vmatmul.mubr.msk.bf16.vlgmr.msra.gmra.mrb[0].mxu0 %vm56_vm2, %v3756_v38 }
 0x141   :  { %2284 = vmatpush1.bf16.msra.mxu0 %v2272_v39  ;;  %2315 = vmatprep.mubr.bf16.mxu0 %v3790_v9  ;;  %v2782_v61 = vpop.permute.xlu0 %2781  ;;  %v2784_v62 = vpop.permute.xlu1 %2783 }
 0x142   :  { %3472 = vmatprep.subr.msk.bf16.mxu0 %vm60_vm1, %v2397_v43  ;;  %v2792_v24 = vsel %vm2791_vm8, %v2782_v61, %v2784_v62  ;;  %v3762_v43 = vld [vmem:[%s4389_s1 + $0xb0] sm:$0xff]   ;;  %s3765_s1 = scalar_lea.vmem %s3335_s16, 1024 }
 0x143   :  { %v2800_v27 = vsel %vm60_vm1, %v2792_v24, 0  ;;  %p3766_p0 = scmp.ne.s32.totalorder %s3335_s16, %s3765_s1  ;;  %p3771_p2 = scmp.lt.s32.totalorder %s3765_s1, %s3765_s1 }
 0x144   :  { %3461 = vmatmul.mubr.msk.bf16.vlgmr.msra.gmra.mrb[0].mxu1 %vm56_vm2, %v3756_v38 }
 0x145   :  { %2327 = vmatpush1.bf16.msra.mxu1 %v2278_v44  ;;  %2358 = vmatprep.mubr.bf16.mxu1 %v3790_v9  ;;  %v2786_v5 = vpop.permute.xlu0 %2785  ;;  %v2788_v8 = vpop.permute.xlu1 %2787  ;;  %p3772_p3 = por %p3771_p2, %p3770_p1 }
 0x146   :  { %3474 = vmatprep.subr.msk.bf16.mxu1 %vm60_vm1, %v2399_v45  ;;  %v2793_v18 = vsel %vm2791_vm8, %v2784_v62, %v2786_v5  ;;  %v2794_v28 = vsel %vm2791_vm8, %v2786_v5, %v2788_v8 }
 0x147   :  { %v2806_v31 = vsel %vm60_vm1, %v2794_v28, 0  ;;  %p3773_p4 = pnand %p3772_p3, %p3766_p0 }
 0x149   :  { %v2790_v14 = vpop.permute.xlu0 %2789  ;;  %v2914_v15 = vpop.permute.xlu1 %2913 }
 0x14a   :  { %v2795_v22 = vsel %vm2791_vm8, %v2788_v8, %v2790_v14 }
 0x14c   :  { %3466 = vmatmul.mubr.msk.bf16.vlgmr.msra.gmra.mrb[0].mxu0 %vm56_vm2, %v3757_v49 }
 0x14d   :  { %2416 = vmatpush1.bf16.msra.mxu0 %v2404_v51  ;;  %2447 = vmatprep.mubr.bf16.mxu0 %v3790_v9  ;;  %v2916_v19 = vpop.permute.xlu0 %2915  ;;  %v2918_v21 = vpop.permute.xlu1 %2917 }
 0x14e   :  { %3479 = vmatprep.subr.msk.bf16.mxu0 %vm60_vm1, %v2529_v54  ;;  %v2925_v29 = vsel %vm2923_vm9, %v2916_v19, %v2918_v21  ;;  %v2924_v33 = vsel %vm2923_vm9, %v2914_v15, %v2916_v19 }
 0x14f   :  { %v2932_v6 = vsel %vm60_vm1, %v2924_v33, 0 }
 0x150   :  { %3468 = vmatmul.mubr.msk.bf16.vlgmr.msra.gmra.mrb[0].mxu1 %vm56_vm2, %v3757_v49 }
 0x151   :  { %2459 = vmatpush1.bf16.msra.mxu1 %v2410_v55  ;;  %2490 = vmatprep.mubr.bf16.mxu1 %v3790_v9  ;;  %v2920_v23 = vpop.permute.xlu0 %2919  ;;  %v2922_v26 = vpop.permute.xlu1 %2921 }
 0x152   :  { %3481 = vmatprep.subr.msk.bf16.mxu1 %vm60_vm1, %v2531_v57  ;;  %v2927_v7 = vsel %vm2923_vm9, %v2920_v23, %v2922_v26  ;;  %v2926_v10 = vsel %vm2923_vm9, %v2918_v21, %v2920_v23 }
 0x153   :  { %v2938_v38 = vsel %vm60_vm1, %v2926_v10, 0 }
 0x155   :  { %v3046_v30 = vpop.permute.xlu0 %3045  ;;  %v3048_v4 = vpop.permute.xlu1 %3047 }
 0x156   :  { %v3056_v42 = vsel %vm3055_vm10, %v3046_v30, %v3048_v4 }
 0x157   :  { %v3064_v44 = vsel %vm60_vm1, %v3056_v42, 0 }
 0x158   :  { %3473 = vmatmul.mubr.msk.bf16.vlgmr.msra.gmra.mrb[0].mxu0 %vm56_vm2, %v3758_v60 }
 0x159   :  { %2548 = vmatpush1.bf16.msra.mxu0 %v2536_v63  ;;  %2579 = vmatprep.mubr.bf16.mxu0 %v3790_v9  ;;  %v3050_v3 = vpop.permute.xlu0 %3049  ;;  %v3052_v32 = vpop.permute.xlu1 %3051 }
 0x15a   :  { %3486 = vmatprep.subr.msk.bf16.mxu0 %vm60_vm1, %v2661_v1  ;;  %v3057_v35 = vsel %vm3055_vm10, %v3048_v4, %v3050_v3  ;;  %v3058_v45 = vsel %vm3055_vm10, %v3050_v3, %v3052_v32 }
 0x15b   :  { %v3070_v49 = vsel %vm60_vm1, %v3058_v45, 0 }
 0x15c   :  { %3475 = vmatmul.mubr.msk.bf16.vlgmr.msra.gmra.mrb[0].mxu1 %vm56_vm2, %v3758_v60 }
 0x15d   :  { %2591 = vmatpush1.bf16.msra.mxu1 %v2542_v2  ;;  %2622 = vmatprep.mubr.bf16.mxu1 %v3790_v9  ;;  %v3054_v36 = vpop.permute.xlu0 %3053  ;;  %v3178_v37 = vpop.permute.xlu1 %3177 }
 0x15e   :  { %3488 = vmatprep.subr.msk.bf16.mxu1 %vm60_vm1, %v2663_v11  ;;  %v3059_v39 = vsel %vm3055_vm10, %v3052_v32, %v3054_v36 }
 0x161   :  { %v3180_v40 = vpop.permute.xlu0 %3179  ;;  %v3182_v41 = vpop.permute.xlu1 %3181 }
 0x162   :  { %v3189_v46 = vsel %vm3187_vm11, %v3180_v40, %v3182_v41  ;;  %v3188_v51 = vsel %vm3187_vm11, %v3178_v37, %v3180_v40 }
 0x163   :  { %v3196_v53 = vsel %vm60_vm1, %v3188_v51, 0 }
 0x164   :  { %3480 = vmatmul.mubr.msk.bf16.vlgmr.msra.gmra.mrb[0].mxu0 %vm56_vm2, %v3759_v13 }
 0x165   :  { %2680 = vmatpush1.bf16.msra.mxu0 %v2668_v16  ;;  %2711 = vmatprep.mubr.bf16.mxu0 %v3790_v9  ;;  %v3184_v47 = vpop.permute.xlu0 %3183  ;;  %v3186_v48 = vpop.permute.xlu1 %3185 }
 0x166   :  { %3493 = vmatprep.subr.msk.bf16.mxu0 %vm60_vm1, %v2793_v18  ;;  %v3191_v50 = vsel %vm3187_vm11, %v3184_v47, %v3186_v48  ;;  %v3190_v54 = vsel %vm3187_vm11, %v3182_v41, %v3184_v47 }
 0x167   :  { %v3202_v55 = vsel %vm60_vm1, %v3190_v54, 0 }
 0x168   :  { %3482 = vmatmul.mubr.msk.bf16.vlgmr.msra.gmra.mrb[0].mxu1 %vm56_vm2, %v3759_v13 }
 0x169   :  { %2723 = vmatpush1.bf16.msra.mxu1 %v2674_v20  ;;  %2754 = vmatprep.mubr.bf16.mxu1 %v3790_v9 }
 0x16a   :  { %3495 = vmatprep.subr.msk.bf16.mxu1 %vm60_vm1, %v2795_v22 }
 0x170   :  { %3487 = vmatmul.mubr.msk.bf16.vlgmr.msra.gmra.mrb[0].mxu0 %vm56_vm2, %v3760_v25 }
 0x171   :  { %2812 = vmatpush1.bf16.msra.mxu0 %v2800_v27  ;;  %2843 = vmatprep.mubr.bf16.mxu0 %v3790_v9 }
 0x172   :  { %3500 = vmatprep.subr.msk.bf16.mxu0 %vm60_vm1, %v2925_v29 }
 0x174   :  { %3489 = vmatmul.mubr.msk.bf16.vlgmr.msra.gmra.mrb[0].mxu1 %vm56_vm2, %v3760_v25 }
 0x175   :  { %2855 = vmatpush1.bf16.msra.mxu1 %v2806_v31  ;;  %2886 = vmatprep.mubr.bf16.mxu1 %v3790_v9 }
 0x176   :  { %3502 = vmatprep.subr.msk.bf16.mxu1 %vm60_vm1, %v2927_v7  ;;  %v3306_v57 = vpop.permute.xlu0 %3305  ;;  %v3311_v59 = vpop.permute.xlu1 %3310 }
 0x17c   :  { %3494 = vmatmul.mubr.msk.bf16.vlgmr.msra.gmra.mrb[0].mxu0 %vm56_vm2, %v3761_v34 }
 0x17d   :  { %2944 = vmatpush1.bf16.msra.mxu0 %v2932_v6  ;;  %2975 = vmatprep.mubr.bf16.mxu0 %v3790_v9 }
 0x17e   :  { %3507 = vmatprep.subr.msk.bf16.mxu0 %vm60_vm1, %v3057_v35 }
 0x180   :  { %3496 = vmatmul.mubr.msk.bf16.vlgmr.msra.gmra.mrb[0].mxu1 %vm56_vm2, %v3761_v34 }
 0x181   :  { %2987 = vmatpush1.bf16.msra.mxu1 %v2938_v38  ;;  %3018 = vmatprep.mubr.bf16.mxu1 %v3790_v9 }
 0x182   :  { %3509 = vmatprep.subr.msk.bf16.mxu1 %vm60_vm1, %v3059_v39 }
 0x188   :  { %3501 = vmatmul.mubr.msk.bf16.vlgmr.msra.gmra.mrb[0].mxu0 %vm56_vm2, %v3762_v43 }
 0x189   :  { %3076 = vmatpush1.bf16.msra.mxu0 %v3064_v44  ;;  %3107 = vmatprep.mubr.bf16.mxu0 %v3790_v9 }
 0x18a   :  { %3514 = vmatprep.subr.msk.bf16.mxu0 %vm60_vm1, %v3189_v46 }
 0x18c   :  { %3503 = vmatmul.mubr.msk.bf16.vlgmr.msra.gmra.mrb[0].mxu1 %vm56_vm2, %v3762_v43 }
 0x18d   :  { %3119 = vmatpush1.bf16.msra.mxu1 %v3070_v49  ;;  %3150 = vmatprep.mubr.bf16.mxu1 %v3790_v9 }
 0x18e   :  { %3516 = vmatprep.subr.msk.bf16.mxu1 %vm60_vm1, %v3191_v50 }
 0x194   :  { %3508 = vmatmul.mubr.msk.bf16.vlgmr.msra.gmra.mrb[0].mxu0 %vm56_vm2, %v3763_v52 }
 0x195   :  { %3208 = vmatpush1.bf16.msra.mxu0 %v3196_v53  ;;  %3239 = vmatprep.mubr.bf16.mxu0 %v3790_v9 }
 0x198   :  { %3510 = vmatmul.mubr.msk.bf16.vlgmr.msra.gmra.mrb[0].mxu1 %vm56_vm2, %v3763_v52 }
 0x199   :  { %3251 = vmatpush1.bf16.msra.mxu1 %v3202_v55  ;;  %3282 = vmatprep.mubr.bf16.mxu1 %v3790_v9 }
 0x1a0   :  { %3515 = vmatmul.mubr.msk.bf16.vlgmr.msra.gmra.mrb[0].mxu0 %vm56_vm2, %v3764_v56 }
 0x1a4   :  { %3517 = vmatmul.mubr.msk.bf16.vlgmr.msra.gmra.mrb[0].mxu1 %vm56_vm2, %v3764_v56 }
 0x273   :  { %v3241_v58 = vpop.f32.mrb[0].mxu0 }
 0x274   :  { %v3313_v60 = vadd.f32 %v3306_v57, %v3241_v58  ;;  %v3243_v61 = vpop.f32.mrb[1].mxu0 }
 0x275   :  { %v3314_v62 = vadd.f32 %v3306_v57, %v3243_v61  ;;  %v3245_v63 = vpop.f32.mrb[2].mxu0 }
 0x276   :  { %3321 = vst [vmem:[#allocation2] sm:$0xff] %v3313_v60  ;;  %v3317_v0 = vadd.f32 %v3311_v59, %v3245_v63  ;;  %v3247_v1 = vpop.f32.mrb[3].mxu0 }
 0x277   :  { %3322 = vst [vmem:[#allocation2 + $0x8] sm:$0xff] %v3314_v62  ;;  %v3318_v9 = vadd.f32 %v3311_v59, %v3247_v1  ;;  %v3284_v2 = vpop.f32.mrb[0].mxu1 }
 0x278   :  { %3325 = vst [vmem:[#allocation2 + $0x20] sm:$0xff] %v3317_v0  ;;  %v3315_v5 = vadd.f32 %v3306_v57, %v3284_v2  ;;  %v3286_v8 = vpop.f32.mrb[1].mxu1 }
 0x279   :  { %3326 = vst [vmem:[#allocation2 + $0x28] sm:$0xff] %v3318_v9  ;;  %v3316_v11 = vadd.f32 %v3306_v57, %v3286_v8  ;;  %v3288_v12 = vpop.f32.mrb[2].mxu1 }
 0x27a   :  { %3323 = vst [vmem:[#allocation2 + $0x10] sm:$0xff] %v3315_v5  ;;  %v3319_v13 = vadd.f32 %v3311_v59, %v3288_v12  ;;  %v3290_v14 = vpop.f32.mrb[3].mxu1 }
 0x27b   :  { %3324 = vst [vmem:[#allocation2 + $0x18] sm:$0xff] %v3316_v11  ;;  %v3320_v15 = vadd.f32 %v3311_v59, %v3290_v14 }
 0x27c   :  { %3327 = vst [vmem:[#allocation2 + $0x30] sm:$0xff] %v3319_v13 }
 0x27d   :  { %3328 = vst [vmem:[#allocation2 + $0x38] sm:$0xff] %v3320_v15 }
 0x27e   :  { %3776 = shalt.err (!%p3773_p4)
}
 0x27f   :  { %s3777_s19 = scalar_lea.hbm %s4391_s3, 1024 }
 0x280   :  { %p3778_p5 = scmp.ne.s32.totalorder %s4391_s3, %s3777_s19  ;;  %p3781_p6 = scmp.lt.u32.totalorder %s3777_s19, %s4391_s3 }
 0x282   :  { %p3783_p7 = pnand %p3781_p6, %p3778_p5 }
 0x284   :  { %3786 = shalt.err (!%p3783_p7)
}
 0x285   :  { %s3815_s2 = smov 512   ;;  %s3816_s0 = smov 32  }
 0x286   :  { %3340 = dma.vmem_to_hbm [thread:$0]  %s3335_s16, 1024, %s4391_s3, [#allocation3], %s3815_s2, %s3815_s2, %s3816_s0  }
 0x287   :  { %3787 = dma.done.wait [#allocation3], 1024  }
 0x288   :  { %3788 = vsyncadd [#allocation3], 4294966272 }
 0x289   :  { %3344 = vsyncpa [#allocation3], 1 }

// kernel: tpu_custom_call.1
= control target key start
LH: loop header
LB: loop body
LE: loop exit
PB: predicated region body
PF: predicated region fallthrough
CT: control target
= control target key end

     0   :  { %8 = vsyncpa [#allocation3], 0  ;;  %s571_s0 = inlined_call_operand.vmem [shape: bf16[16,152], index: 0, kind: input, shape index: {}]   ;;  %s572_s1 = inlined_call_operand.hbm [shape: bf16[152,384], index: 1, kind: input, shape index: {}]   ;;  %s573_s2 = inlined_call_operand.vmem [shape: f32[16,1], index: 2, kind: input, shape index: {}]   ;;  %s574_s3 = inlined_call_operand.hbm [shape: f32[16,384], index: 3, kind: output, shape index: {}]  }
   0x1   :  { %9 = vsyncpa [#allocation4], 0  ;;  %s497_s12 = smov [#allocation2]   ;;  %s449_s16 = scalar_lea.hbm %s572_s1, 3648 }
   0x2   :  { %s17_s13 = sshll.u32 %s497_s12, 4  ;;  %p450_p0 = scmp.ne.s32.totalorder %s572_s1, %s449_s16  ;;  %s18_s13 = int_to_ptr.vmem [resolvable:$true] %s17_s13 }
   0x3   :  { %p453_p1 = scmp.lt.u32.totalorder %s449_s16, %s572_s1 }
   0x5   :  { %p455_p2 = pnand %p453_p1, %p450_p0 }
   0x7   :  { %458 = shalt.err (!%p455_p2)
}
   0x8   :  { %s459_s21 = scalar_lea.vmem %s18_s13, 3648  ;;  %p464_p4 = scmp.lt.s32.totalorder %s18_s13, %s18_s13 }
   0x9   :  { %p460_p3 = scmp.ne.s32.totalorder %s18_s13, %s459_s21  ;;  %p465_p5 = scmp.lt.s32.totalorder %s459_s21, %s459_s21 }
   0xb   :  { %p466_p6 = por %p465_p5, %p464_p4 }
   0xd   :  { %p467_p7 = pnand %p466_p6, %p460_p3 }
   0xf   :  { %470 = shalt.err (!%p467_p7)
}
  0x10   :  { %s498_s22 = smov 192   ;;  %s499_s23 = smov 12  }
  0x11   :  { %23 = dma.hbm_to_vmem [thread:$0]  %s572_s1, 3648, %s18_s13, [#allocation3], %s498_s22, %s498_s22, %s499_s23  }
  0x12   :  { %493 = dma.done.wait [#allocation3], 3648  }
  0x13   :  { %494 = vsyncadd [#allocation3], 4294963648  ;;  %v500_v0 = vmov 0   ;;  %v407_v1 = vld [vmem:[#allocation2 + $0x4] ss:$12 sps:$4 sm:$0xff]   ;;  %vm243_vm0 = vcmask 195584  }
  0x14   :  { %300 = vmatprep.subr.bf16.mxu1 %v500_v0  ;;  %406 = vset.pattern.permute.xlu0 %v500_v0  ;;  %v409_v2 = vld [vmem:[#allocation2 + $0x8] ss:$12 sps:$4 sm:$0xff]   ;;  %v410_v3 = vld [vmem:[#allocation2] ss:$12 sps:$4 sm:$0xff]   ;;  %v414_v6 = vld [vmem:[#allocation2 + $0x18] ss:$12 sps:$4 sm:$0xff]  }
  0x15   :  { %257 = vmatprep.subr.bf16.mxu0 %v407_v1  ;;  %301 = vmatpush1.bf16.msra.mxu1 %v409_v2  ;;  %v411_v4 = vld [vmem:[#allocation2 + $0x1c] ss:$12 sps:$4 sm:$0xff]   ;;  %v413_v5 = vld [vmem:[#allocation2 + $0x20] ss:$12 sps:$4 sm:$0xff]   ;;  %v417_v8 = vld [vmem:[#allocation2 + $0x38] ss:$12 sps:$4 sm:$0xff]  }
  0x16   :  { %258 = vmatpush1.bf16.msra.mxu0 %v410_v3  ;;  %302 = vmatprep.subr.bf16.mxu1 %v500_v0  ;;  %v415_v7 = vld [vmem:[#allocation2 + $0x34] ss:$12 sps:$4 sm:$0xff]   ;;  %v418_v9 = vld [vmem:[#allocation2 + $0x30] ss:$12 sps:$4 sm:$0xff]   ;;  %v419_v10 = vld [vmem:[#allocation2 + $0x4c] ss:$12 sps:$4 sm:$0xff]  }
  0x17   :  { %259 = vmatprep.subr.bf16.mxu0 %v411_v4  ;;  %v421_v11 = vld [vmem:[#allocation2 + $0x50] ss:$12 sps:$4 sm:$0xff]   ;;  %v422_v12 = vld [vmem:[#allocation2 + $0x48] ss:$12 sps:$4 sm:$0xff]   ;;  %v426_v15 = vld [vmem:[#allocation2 + $0x60] ss:$12 sps:$4 sm:$0xff]  }
  0x18   :  { %v423_v13 = vld [vmem:[#allocation2 + $0x64] ss:$12 sps:$4 sm:$0xff]   ;;  %v425_v14 = vld [vmem:[#allocation2 + $0x68] ss:$12 sps:$4 sm:$0xff]   ;;  %v429_v17 = vld [vmem:[#allocation2 + $0x80] ss:$12 sps:$4 sm:$0xff]  }
  0x19   :  { %303 = vmatpush1.bf16.msra.mxu1 %v413_v5  ;;  %v427_v16 = vld [vmem:[#allocation2 + $0x7c] ss:$12 sps:$4 sm:$0xff]   ;;  %v430_v18 = vld [vmem:[#allocation2 + $0x78] ss:$12 sps:$4 sm:$0xff]   ;;  %v431_v19 = vld [vmem:[#allocation2 + $0x94] ss:$12 sps:$4 sm:$0xff]  }
  0x1a   :  { %260 = vmatpush1.bf16.msra.mxu0 %v414_v6  ;;  %304 = vmatprep.subr.bf16.mxu1 %v500_v0  ;;  %v433_v20 = vld [vmem:[#allocation2 + $0x98] ss:$12 sps:$4 sm:$0xff]   ;;  %v434_v23 = vld [vmem:[#allocation2 + $0x90] ss:$12 sps:$4 sm:$0xff]   ;;  %v71_v26 = vld [vmem:[%s573_s2 + $0x8] sm:$0xff]  ;;  %vm247_vm1 = vcmask 1043456  }
  0x1b   :  { %261 = vmatprep.subr.bf16.mxu0 %v415_v7  ;;  %v448_v21 = vld [vmem:[%s571_s0 + $0x4] ss:$8 sps:$4 sm:$0xff]   ;;  %v437_v25 = vld [vmem:[#allocation2 + $0xb0] ss:$12 sps:$4 sm:$0xff]   ;;  %v438_v27 = vld [vmem:[#allocation2 + $0xa8] ss:$12 sps:$4 sm:$0xff]  }
  0x1c   :  { %v70_v22 = vld [vmem:[%s573_s2] sm:$0xff]  ;;  %v435_v24 = vld [vmem:[#allocation2 + $0xac] ss:$12 sps:$4 sm:$0xff]   ;;  %398 = vmatprep.mubr.msk.bf16.mxu1 %vm243_vm0, %v448_v21  ;;  %397 = vmatprep.mubr.msk.bf16.mxu0 %vm243_vm0, %v448_v21  ;;  %v441_v30 = vld [vmem:[#allocation2 + $0xc8] ss:$12 sps:$4 sm:$0xff]   ;;  %s501_s5 = smov [#allocation5]  }
  0x1d   :  { %305 = vmatpush1.bf16.msra.mxu1 %v417_v8  ;;  %74 = vperm.xlu0 %406, %v70_v22   ;;  %v439_v28 = vld [vmem:[#allocation2 + $0xc4] ss:$12 sps:$4 sm:$0xff]   ;;  %v68_v29 = vld [vmem:[#allocation2 + $0xd8] sm:$0xff]  ;;  %v442_v31 = vld [vmem:[#allocation2 + $0xc0] ss:$12 sps:$4 sm:$0xff]   ;;  %s352_s6 = sshll.u32 %s501_s5, 4  ;;  %s353_s6 = int_to_ptr.vmem [resolvable:$true] %s352_s6 }
  0x1e   :  { %262 = vmatpush1.bf16.msra.mxu0 %v418_v9  ;;  %306 = vmatprep.subr.bf16.mxu1 %v500_v0  ;;  %v444_v32 = vld [vmem:[#allocation2 + $0xe0] ss:$0 sps:$4 sm:$0xff]   ;;  %v394_v33 = vcombine.high %v68_v29, %v68_v29  ;;  %v393_v34 = vcombine.low %v68_v29, %v68_v29  ;;  %p476_p9 = scmp.lt.s32.totalorder %s353_s6, %s353_s6 }
  0x1f   :  { %263 = vmatprep.subr.bf16.mxu0 %v419_v10  ;;  %v255_v35 = vsel %vm247_vm1, %v444_v32, 0  ;;  %v446_v37 = vld [vmem:[%s571_s0] ss:$8 sps:$4 sm:$0xff]   ;;  %s471_s0 = scalar_lea.vmem %s353_s6, 768 }
  0x20   :  { %v249_v36 = vsel %vm247_vm1, %v393_v34, 0  ;;  %p472_p8 = scmp.ne.s32.totalorder %s353_s6, %s471_s0  ;;  %p477_p10 = scmp.lt.s32.totalorder %s471_s0, %s471_s0 }
  0x21   :  { %307 = vmatpush1.bf16.msra.mxu1 %v421_v11  ;;  %79 = vperm.xlu0 %406, %v71_v26  }
  0x22   :  { %264 = vmatpush1.bf16.msra.mxu0 %v422_v12  ;;  %308 = vmatprep.subr.bf16.mxu1 %v500_v0  ;;  %p478_p11 = por %p477_p10, %p476_p9 }
  0x23   :  { %265 = vmatprep.subr.bf16.mxu0 %v423_v13 }
  0x24   :  { %p479_p12 = pnand %p478_p11, %p472_p8 }
  0x25   :  { %309 = vmatpush1.bf16.msra.mxu1 %v425_v14 }
  0x26   :  { %266 = vmatpush1.bf16.msra.mxu0 %v426_v15  ;;  %310 = vmatprep.subr.bf16.mxu1 %v500_v0 }
  0x27   :  { %267 = vmatprep.subr.bf16.mxu0 %v427_v16 }
  0x29   :  { %311 = vmatpush1.bf16.msra.mxu1 %v429_v17 }
  0x2a   :  { %268 = vmatpush1.bf16.msra.mxu0 %v430_v18  ;;  %312 = vmatprep.subr.bf16.mxu1 %v500_v0 }
  0x2b   :  { %269 = vmatprep.subr.bf16.mxu0 %v431_v19 }
  0x2d   :  { %313 = vmatpush1.bf16.msra.mxu1 %v433_v20 }
  0x2e   :  { %270 = vmatpush1.bf16.msra.mxu0 %v434_v23  ;;  %314 = vmatprep.subr.bf16.mxu1 %v500_v0 }
  0x2f   :  { %271 = vmatprep.subr.bf16.mxu0 %v435_v24 }
  0x31   :  { %315 = vmatpush1.bf16.msra.mxu1 %v437_v25 }
  0x32   :  { %272 = vmatpush1.bf16.msra.mxu0 %v438_v27  ;;  %316 = vmatprep.subr.bf16.mxu1 %v500_v0 }
  0x33   :  { %273 = vmatprep.subr.bf16.mxu0 %v439_v28 }
  0x35   :  { %317 = vmatpush1.bf16.msra.mxu1 %v441_v30 }
  0x36   :  { %274 = vmatpush1.bf16.msra.mxu0 %v442_v31  ;;  %318 = vmatprep.subr.bf16.mxu1 %v500_v0 }
  0x37   :  { %396 = vmatprep.subr.msk.bf16.mxu0 %vm247_vm1, %v394_v33 }
  0x39   :  { %319 = vmatpush1.bf16.msra.mxu1 %v255_v35 }
  0x3a   :  { %276 = vmatpush1.bf16.msra.mxu0 %v249_v36 }
  0x3c   :  { %333 = vmatmul.mubr.bf16.vlgmr.msra.gmra.mrb[0].mxu1 %v446_v37 }
  0x3d   :  { %290 = vmatmul.mubr.bf16.vlgmr.msra.gmra.mrb[0].mxu0 %v446_v37 }
  0x9c   :  { %v75_v38 = vpop.permute.xlu0 %74 }
  0xa0   :  { %v80_v39 = vpop.permute.xlu0 %79 }
 0x10f   :  { %v334_v40 = vpop.f32.mrb[0].mxu1 }
 0x110   :  { %v335_v41 = vadd.f32 %v334_v40, %v75_v38  ;;  %v291_v42 = vpop.f32.mrb[0].mxu0  ;;  %v336_v43 = vpop.f32.mrb[1].mxu1 }
 0x111   :  { %v292_v44 = vadd.f32 %v291_v42, %v75_v38  ;;  %v293_v45 = vpop.f32.mrb[1].mxu0  ;;  %v337_v46 = vpop.f32.mrb[2].mxu1 }
 0x112   :  { %343 = vst [vmem:[#allocation5 + $0x10] sm:$0xff] %v335_v41  ;;  %v294_v47 = vadd.f32 %v293_v45, %v75_v38  ;;  %v338_v48 = vadd.f32 %v337_v46, %v80_v39  ;;  %v295_v49 = vpop.f32.mrb[2].mxu0  ;;  %v339_v50 = vpop.f32.mrb[3].mxu1 }
 0x113   :  { %341 = vst [vmem:[#allocation5] sm:$0xff] %v292_v44  ;;  %v296_v51 = vadd.f32 %v295_v49, %v80_v39  ;;  %v297_v52 = vpop.f32.mrb[3].mxu0 }
 0x114   :  { %342 = vst [vmem:[#allocation5 + $0x8] sm:$0xff] %v294_v47  ;;  %346 = vst [vmem:[#allocation5 + $0x28] sm:$0xff] %v338_v48  ;;  %v298_v53 = vadd.f32 %v297_v52, %v80_v39 }
 0x115   :  { %344 = vst [vmem:[#allocation5 + $0x18] sm:$0xff] %v296_v51 }
 0x116   :  { %345 = vst [vmem:[#allocation5 + $0x20] sm:$0xff] %v298_v53 }
 0x117   :  { %482 = shalt.err (!%p479_p12)
}
 0x118   :  { %s483_s9 = scalar_lea.hbm %s574_s3, 768 }
 0x119   :  { %p484_p13 = scmp.ne.s32.totalorder %s574_s3, %s483_s9  ;;  %p487_p0 = scmp.lt.u32.totalorder %s483_s9, %s574_s3 }
 0x11b   :  { %p489_p1 = pnand %p487_p0, %p484_p13 }
 0x11d   :  { %492 = shalt.err (!%p489_p1)
}
 0x11e   :  { %s502_s14 = smov 384   ;;  %s503_s15 = smov 24  }
 0x11f   :  { %358 = dma.vmem_to_hbm [thread:$0]  %s353_s6, 768, %s574_s3, [#allocation4], %s502_s14, %s502_s14, %s503_s15  }
 0x120   :  { %495 = dma.done.wait [#allocation4], 768  }
 0x121   :  { %496 = vsyncadd [#allocation4], 4294966528 }
 0x122   :  { %362 = vsyncpa [#allocation3], 1 }
 0x123   :  { %363 = vsyncpa [#allocation4], 1 }

</bundles_post_ra>
